<compile_context>
chip_gen: v7x
topology: tpu7x:2x2x1
jax: 0.10.0
libtpu: 0.0.40
codegen_flags: <defaults>
</compile_context>

<pallas_src>
import functools

import jax
import jax.numpy as jnp
from jax import lax
from jax.experimental import pallas as pl
from jax.experimental.pallas import tpu as pltpu


def _attention_kernel(x_ref, w_ref, out_ref, *, C, H, W):
    """One image per grid step, laid out as (H, W*C) — the lane axis is W*C."""
    WC = W * C
    f32 = jnp.float32

    # Row offsets inside the packed-weight operand.
    R_W0 = 0                     # 25 rows: 5x5 depthwise taps (column-masked)
    R_W1 = 25                    # 49 rows: 7x7 dil-3 depthwise taps (column-masked)
    R_V = 74                     # 2C-1 rows: 1x1 conv shift weights (channel-masked)
    R_B0 = R_V + 2 * C - 1       # bias rows (tiled over W)
    R_B1 = R_B0 + 1
    R_B2 = R_B1 + 1

    x = x_ref[...].astype(f32)                        # (H, WC), lane-dense

    # ---- conv0: depthwise 5x5, padding=2, groups=C ---------------------------
    # Zero-pad rows only (lane width stays WC); column offsets are lane rolls.
    # Boundary taps that would wrap around the row are zeroed in the weights.
    zr2 = jnp.zeros((2, WC), f32)
    xp = jnp.concatenate([zr2, x, zr2], axis=0)       # (H+4, WC)
    acc = jnp.zeros((H, WC), f32) + w_ref[R_B0:R_B0 + 1, :]
    for kw in range(5):
        shift = (-(kw - 2) * C) % WC
        rp = pltpu.roll(xp, shift=shift, axis=1) if shift else xp
        for kh in range(5):
            r = R_W0 + kh * 5 + kw
            acc = acc + rp[kh:kh + H, :] * w_ref[r:r + 1, :]

    # ---- conv_spatial: depthwise 7x7, dilation=3, padding=9, groups=C --------
    zr9 = jnp.zeros((9, WC), f32)
    ap = jnp.concatenate([zr9, acc, zr9], axis=0)     # (H+18, WC)
    acc2 = jnp.zeros((H, WC), f32) + w_ref[R_B1:R_B1 + 1, :]
    for kw in range(7):
        shift = (-3 * (kw - 3) * C) % WC
        rp = pltpu.roll(ap, shift=shift, axis=1) if shift else ap
        for kh in range(7):
            r = R_W1 + kh * 7 + kw
            acc2 = acc2 + rp[3 * kh:3 * kh + H, :] * w_ref[r:r + 1, :]

    # ---- conv1: 1x1 channel mix on the VPU, fused with the gating epilogue ---
    # attn[h, w*C+co] = b2[co] + sum_s acc2[h, w*C+co+s] * v[s][co], where
    # v[s] is pre-zeroed wherever co+s is outside [0, C) (also covers the
    # roll wrap-around at the row ends).
    attn = jnp.zeros((H, WC), f32) + w_ref[R_B2:R_B2 + 1, :]
    for idx, s in enumerate(range(-(C - 1), C)):
        shift = (-s) % WC
        rs = pltpu.roll(acc2, shift=shift, axis=1) if shift else acc2
        attn = attn + rs * w_ref[R_V + idx:R_V + idx + 1, :]

    # ---- gating: u * attn -----------------------------------------------------
    out_ref[...] = (x * attn).astype(out_ref.dtype)


def prepare_attention_params(w0, b0, w1, b1, w2t, b2, W):
    """One-time packing of all weights/biases into a single (rows, W*C) f32 array.

    Layouts (converted from the torch parameters):
      w0  (5,5,C), b0 (C,)   — conv0.weight (C,1,5,5) -> (5,5,C) / conv0.bias
      w1  (7,7,C), b1 (C,)   — conv_spatial.weight (C,1,7,7) -> (7,7,C) / bias
      w2t (Cin,Cout), b2 (C,)— conv1.weight (Cout,Cin,1,1) TRANSPOSED to (Cin,Cout) / bias

    Depthwise taps whose source column falls outside the image are zeroed here,
    so the in-kernel lane rolls need no runtime masking.
    """
    C = w0.shape[-1]
    w_idx = jnp.arange(W)
    rows = []

    # conv0 taps: source pixel is w + kw - 2.
    for kh in range(5):
        for kw in range(5):
            valid = ((w_idx + kw - 2 >= 0) & (w_idx + kw - 2 < W)).astype(jnp.float32)
            rows.append((valid[:, None] * w0[kh, kw][None, :]).reshape(-1))

    # conv_spatial taps: source pixel is w + 3*(kw - 3).
    for kh in range(7):
        for kw in range(7):
            off = 3 * (kw - 3)
            valid = ((w_idx + off >= 0) & (w_idx + off < W)).astype(jnp.float32)
            rows.append((valid[:, None] * w1[kh, kw][None, :]).reshape(-1))

    # conv1 1x1 shift weights: v[s][w*C+co] = w2t[co+s, co] if co+s in [0, C) else 0.
    co = jnp.arange(C)
    for s in range(-(C - 1), C):
        ci = co + s
        valid = ((ci >= 0) & (ci < C)).astype(jnp.float32)
        vals = w2t[jnp.clip(ci, 0, C - 1), co] * valid
        rows.append(jnp.tile(vals, W))

    # Biases, tiled across W so they broadcast over the fused lane axis.
    rows.append(jnp.tile(b0, W))
    rows.append(jnp.tile(b1, W))
    rows.append(jnp.tile(b2, W))

    pack = jnp.stack(rows, axis=0).astype(jnp.float32)
    pad = (-pack.shape[0]) % 8                        # sublane-align the packed block
    if pad:
        pack = jnp.concatenate([pack, jnp.zeros((pad, pack.shape[1]), jnp.float32)], 0)
    return pack


def attention_module_fused(x_fused, wpack, *, C):
    """Fused-layout entry point: x_fused is (B, H, W*C), stays lane-dense end to end."""
    B, H, WC = x_fused.shape
    W = WC // C
    kernel = functools.partial(_attention_kernel, C=C, H=H, W=W)
    return pl.pallas_call(
        kernel,
        out_shape=jax.ShapeDtypeStruct((B, H, WC), x_fused.dtype),
        grid_spec=pltpu.PrefetchScalarGridSpec(
            num_scalar_prefetch=0,
            grid=(B,),                                # parallel images -> both v7x TCs
            in_specs=[
                pl.BlockSpec((None, H, WC), lambda b: (b, 0, 0)),
                pl.BlockSpec((wpack.shape[0], WC), lambda b: (0, 0)),
            ],
            out_specs=pl.BlockSpec((None, H, WC), lambda b: (b, 0, 0)),
        ),
        compiler_params=pltpu.CompilerParams(
            dimension_semantics=("parallel",),
            vmem_limit_bytes=32 * 1024 * 1024,        # safe on v7x (64 MiB physical)
        ),
    )(x_fused, wpack)


def attention_module_nchw(x_nchw, wpack):
    """PyTorch-facing convenience shim: NCHW in, NCHW out.

    In a real network, keep activations in the fused (B, H, W*C) layout and call
    attention_module_fused directly to avoid per-call transposes.
    """
    B, C, H, W = x_nchw.shape
    x_fused = jnp.transpose(x_nchw, (0, 2, 3, 1)).reshape(B, H, W * C)
    y = attention_module_fused(x_fused, wpack, C=C)
    return jnp.transpose(y.reshape(B, H, W, C), (0, 3, 1, 2))


def reference_nhwc(x, w0, b0, w1, b1, w2t, b2):
    """Pure-JAX reference using lax.conv_general_dilated (NHWC)."""
    C = x.shape[-1]
    dn = ('NHWC', 'HWIO', 'NHWC')
    a = lax.conv_general_dilated(
        x, w0.reshape(5, 5, 1, C), (1, 1), ((2, 2), (2, 2)),
        dimension_numbers=dn, feature_group_count=C) + b0.reshape(1, 1, 1, C)
    a = lax.conv_general_dilated(
        a, w1.reshape(7, 7, 1, C), (1, 1), ((9, 9), (9, 9)),
        rhs_dilation=(3, 3), dimension_numbers=dn,
        feature_group_count=C) + b1.reshape(1, 1, 1, C)
    a = lax.conv_general_dilated(
        a, w2t.reshape(1, 1, C, C), (1, 1), ((0, 0), (0, 0)),
        dimension_numbers=dn) + b2.reshape(1, 1, 1, C)
    return x * a


if __name__ == "__main__":
    B, C, H, W = 2, 8, 16, 16          # dim = 8 -> W*C = 128 (one full vreg of lanes)

    key = jax.random.PRNGKey(0)
    k0, k1, k2, k3, k4, k5, kx = jax.random.split(key, 7)

    # Synthetic parameters (shapes from the module's __init__):
    #  conv0.weight (C,1,5,5) -> (5,5,C); conv0.bias (C,)
    #  conv_spatial.weight (C,1,7,7) -> (7,7,C); bias (C,)
    #  conv1.weight (C,C,1,1) -> stored transposed as (Cin,Cout); bias (C,)
    w0 = jax.random.normal(k0, (5, 5, C), jnp.float32) * 0.10
    b0 = jax.random.normal(k1, (C,), jnp.float32) * 0.10
    w1 = jax.random.normal(k2, (7, 7, C), jnp.float32) * 0.05
    b1 = jax.random.normal(k3, (C,), jnp.float32) * 0.10
    w2t = jax.random.normal(k4, (C, C), jnp.float32) * 0.10     # (Cin, Cout)
    b2 = jax.random.normal(k5, (C,), jnp.float32) * 0.10

    # One-time weight packing (outside the per-call path).
    wpack = prepare_attention_params(w0, b0, w1, b1, w2t, b2, W)

    # Input in the module's native NCHW layout.
    x_nchw = jax.random.normal(kx, (B, C, H, W), jnp.float32)

    out = attention_module_nchw(x_nchw, wpack)
    out = jax.block_until_ready(out)

    # Cross-check against a pure-JAX reference.
    x_nhwc = jnp.transpose(x_nchw, (0, 2, 3, 1))
    ref_nchw = jnp.transpose(reference_nhwc(x_nhwc, w0, b0, w1, b1, w2t, b2), (0, 3, 1, 2))
    assert out.shape == x_nchw.shape
    assert jnp.allclose(out, ref_nchw, rtol=1e-4, atol=1e-4), "mismatch vs reference"

    print("KERNEL_OK")
</pallas_src>

<mosaic_0001>
module attributes {stable_mosaic.version = 11 : i64} {
  func.func @_attention_kernel(%arg0: i32, %arg1: memref<1x16x128xf32, #tpu.memory_space<vmem>>, %arg2: memref<96x128xf32, #tpu.memory_space<vmem>>, %arg3: memref<1x16x128xf32, #tpu.memory_space<vmem>>) attributes {dimension_semantics = [#tpu.dimension_semantics<parallel>], iteration_bounds = array<i64: 2>, scalar_prefetch = 0 : i64, scratch_operands = 0 : i64, tpu.core_type = #tpu.core_type<tc>, window_params = [{transform_indices = @transform_0, window_bounds = array<i64: 1, 16, 128>}, {pipeline_mode = #tpu.pipeline_mode<synchronous>, transform_indices = @transform_1, window_bounds = array<i64: 96, 128>}, {transform_indices = @transform_2, window_bounds = array<i64: 1, 16, 128>}]} {
    %c0 = arith.constant 0 : index
    %c0_0 = arith.constant 0 : index
    %c0_1 = arith.constant 0 : index
    %0 = vector.load %arg1[%c0, %c0_0, %c0_1] : memref<1x16x128xf32, #tpu.memory_space<vmem>>, vector<1x16x128xf32>
    %1 = vector.shape_cast %0 : vector<1x16x128xf32> to vector<16x128xf32>
    %cst = arith.constant 0.000000e+00 : f32
    %2 = vector.broadcast %cst : f32 to vector<2x128xf32>
    %3 = tpu.concatenate %2, %1, %2 in 0 : vector<2x128xf32>, vector<16x128xf32>, vector<2x128xf32> -> vector<20x128xf32>
    %cst_2 = arith.constant 0.000000e+00 : f32
    %4 = vector.broadcast %cst_2 : f32 to vector<16x128xf32>
    %c89 = arith.constant 89 : index
    %c0_3 = arith.constant 0 : index
    %5 = vector.load %arg2[%c89, %c0_3] : memref<96x128xf32, #tpu.memory_space<vmem>>, vector<1x128xf32>
    %6 = vector.broadcast %5 : vector<1x128xf32> to vector<16x128xf32>
    %7 = arith.addf %4, %6 : vector<16x128xf32>
    %c16_i32 = arith.constant 16 : i32
    %8 = tpu.dynamic_rotate %3 by %c16_i32 dim 1 : vector<20x128xf32>, i32 -> vector<20x128xf32>
    %9 = vector.extract_strided_slice %8 {offsets = [0, 0], sizes = [16, 128], strides = [1, 1]} : vector<20x128xf32> to vector<16x128xf32>
    %c0_4 = arith.constant 0 : index
    %c0_5 = arith.constant 0 : index
    %10 = vector.load %arg2[%c0_4, %c0_5] : memref<96x128xf32, #tpu.memory_space<vmem>>, vector<1x128xf32>
    %11 = vector.broadcast %10 : vector<1x128xf32> to vector<16x128xf32>
    %12 = arith.mulf %9, %11 : vector<16x128xf32>
    %13 = arith.addf %7, %12 : vector<16x128xf32>
    %14 = vector.extract_strided_slice %8 {offsets = [1, 0], sizes = [16, 128], strides = [1, 1]} : vector<20x128xf32> to vector<16x128xf32>
    %c5 = arith.constant 5 : index
    %c0_6 = arith.constant 0 : index
    %15 = vector.load %arg2[%c5, %c0_6] : memref<96x128xf32, #tpu.memory_space<vmem>>, vector<1x128xf32>
    %16 = vector.broadcast %15 : vector<1x128xf32> to vector<16x128xf32>
    %17 = arith.mulf %14, %16 : vector<16x128xf32>
    %18 = arith.addf %13, %17 : vector<16x128xf32>
    %19 = vector.extract_strided_slice %8 {offsets = [2, 0], sizes = [16, 128], strides = [1, 1]} : vector<20x128xf32> to vector<16x128xf32>
    %c10 = arith.constant 10 : index
    %c0_7 = arith.constant 0 : index
    %20 = vector.load %arg2[%c10, %c0_7] : memref<96x128xf32, #tpu.memory_space<vmem>>, vector<1x128xf32>
    %21 = vector.broadcast %20 : vector<1x128xf32> to vector<16x128xf32>
    %22 = arith.mulf %19, %21 : vector<16x128xf32>
    %23 = arith.addf %18, %22 : vector<16x128xf32>
    %24 = vector.extract_strided_slice %8 {offsets = [3, 0], sizes = [16, 128], strides = [1, 1]} : vector<20x128xf32> to vector<16x128xf32>
    %c15 = arith.constant 15 : index
    %c0_8 = arith.constant 0 : index
    %25 = vector.load %arg2[%c15, %c0_8] : memref<96x128xf32, #tpu.memory_space<vmem>>, vector<1x128xf32>
    %26 = vector.broadcast %25 : vector<1x128xf32> to vector<16x128xf32>
    %27 = arith.mulf %24, %26 : vector<16x128xf32>
    %28 = arith.addf %23, %27 : vector<16x128xf32>
    %29 = vector.extract_strided_slice %8 {offsets = [4, 0], sizes = [16, 128], strides = [1, 1]} : vector<20x128xf32> to vector<16x128xf32>
    %c20 = arith.constant 20 : index
    %c0_9 = arith.constant 0 : index
    %30 = vector.load %arg2[%c20, %c0_9] : memref<96x128xf32, #tpu.memory_space<vmem>>, vector<1x128xf32>
    %31 = vector.broadcast %30 : vector<1x128xf32> to vector<16x128xf32>
    %32 = arith.mulf %29, %31 : vector<16x128xf32>
    %33 = arith.addf %28, %32 : vector<16x128xf32>
    %c8_i32 = arith.constant 8 : i32
    %34 = tpu.dynamic_rotate %3 by %c8_i32 dim 1 : vector<20x128xf32>, i32 -> vector<20x128xf32>
    %35 = vector.extract_strided_slice %34 {offsets = [0, 0], sizes = [16, 128], strides = [1, 1]} : vector<20x128xf32> to vector<16x128xf32>
    %c1 = arith.constant 1 : index
    %c0_10 = arith.constant 0 : index
    %36 = vector.load %arg2[%c1, %c0_10] : memref<96x128xf32, #tpu.memory_space<vmem>>, vector<1x128xf32>
    %37 = vector.broadcast %36 : vector<1x128xf32> to vector<16x128xf32>
    %38 = arith.mulf %35, %37 : vector<16x128xf32>
    %39 = arith.addf %33, %38 : vector<16x128xf32>
    %40 = vector.extract_strided_slice %34 {offsets = [1, 0], sizes = [16, 128], strides = [1, 1]} : vector<20x128xf32> to vector<16x128xf32>
    %c6 = arith.constant 6 : index
    %c0_11 = arith.constant 0 : index
    %41 = vector.load %arg2[%c6, %c0_11] : memref<96x128xf32, #tpu.memory_space<vmem>>, vector<1x128xf32>
    %42 = vector.broadcast %41 : vector<1x128xf32> to vector<16x128xf32>
    %43 = arith.mulf %40, %42 : vector<16x128xf32>
    %44 = arith.addf %39, %43 : vector<16x128xf32>
    %45 = vector.extract_strided_slice %34 {offsets = [2, 0], sizes = [16, 128], strides = [1, 1]} : vector<20x128xf32> to vector<16x128xf32>
    %c11 = arith.constant 11 : index
    %c0_12 = arith.constant 0 : index
    %46 = vector.load %arg2[%c11, %c0_12] : memref<96x128xf32, #tpu.memory_space<vmem>>, vector<1x128xf32>
    %47 = vector.broadcast %46 : vector<1x128xf32> to vector<16x128xf32>
    %48 = arith.mulf %45, %47 : vector<16x128xf32>
    %49 = arith.addf %44, %48 : vector<16x128xf32>
    %50 = vector.extract_strided_slice %34 {offsets = [3, 0], sizes = [16, 128], strides = [1, 1]} : vector<20x128xf32> to vector<16x128xf32>
    %c16 = arith.constant 16 : index
    %c0_13 = arith.constant 0 : index
    %51 = vector.load %arg2[%c16, %c0_13] : memref<96x128xf32, #tpu.memory_space<vmem>>, vector<1x128xf32>
    %52 = vector.broadcast %51 : vector<1x128xf32> to vector<16x128xf32>
    %53 = arith.mulf %50, %52 : vector<16x128xf32>
    %54 = arith.addf %49, %53 : vector<16x128xf32>
    %55 = vector.extract_strided_slice %34 {offsets = [4, 0], sizes = [16, 128], strides = [1, 1]} : vector<20x128xf32> to vector<16x128xf32>
    %c21 = arith.constant 21 : index
    %c0_14 = arith.constant 0 : index
    %56 = vector.load %arg2[%c21, %c0_14] : memref<96x128xf32, #tpu.memory_space<vmem>>, vector<1x128xf32>
    %57 = vector.broadcast %56 : vector<1x128xf32> to vector<16x128xf32>
    %58 = arith.mulf %55, %57 : vector<16x128xf32>
    %59 = arith.addf %54, %58 : vector<16x128xf32>
    %60 = vector.extract_strided_slice %3 {offsets = [0, 0], sizes = [16, 128], strides = [1, 1]} : vector<20x128xf32> to vector<16x128xf32>
    %c2 = arith.constant 2 : index
    %c0_15 = arith.constant 0 : index
    %61 = vector.load %arg2[%c2, %c0_15] : memref<96x128xf32, #tpu.memory_space<vmem>>, vector<1x128xf32>
    %62 = vector.broadcast %61 : vector<1x128xf32> to vector<16x128xf32>
    %63 = arith.mulf %60, %62 : vector<16x128xf32>
    %64 = arith.addf %59, %63 : vector<16x128xf32>
    %65 = vector.extract_strided_slice %3 {offsets = [1, 0], sizes = [16, 128], strides = [1, 1]} : vector<20x128xf32> to vector<16x128xf32>
    %c7 = arith.constant 7 : index
    %c0_16 = arith.constant 0 : index
    %66 = vector.load %arg2[%c7, %c0_16] : memref<96x128xf32, #tpu.memory_space<vmem>>, vector<1x128xf32>
    %67 = vector.broadcast %66 : vector<1x128xf32> to vector<16x128xf32>
    %68 = arith.mulf %65, %67 : vector<16x128xf32>
    %69 = arith.addf %64, %68 : vector<16x128xf32>
    %70 = vector.extract_strided_slice %3 {offsets = [2, 0], sizes = [16, 128], strides = [1, 1]} : vector<20x128xf32> to vector<16x128xf32>
    %c12 = arith.constant 12 : index
    %c0_17 = arith.constant 0 : index
    %71 = vector.load %arg2[%c12, %c0_17] : memref<96x128xf32, #tpu.memory_space<vmem>>, vector<1x128xf32>
    %72 = vector.broadcast %71 : vector<1x128xf32> to vector<16x128xf32>
    %73 = arith.mulf %70, %72 : vector<16x128xf32>
    %74 = arith.addf %69, %73 : vector<16x128xf32>
    %75 = vector.extract_strided_slice %3 {offsets = [3, 0], sizes = [16, 128], strides = [1, 1]} : vector<20x128xf32> to vector<16x128xf32>
    %c17 = arith.constant 17 : index
    %c0_18 = arith.constant 0 : index
    %76 = vector.load %arg2[%c17, %c0_18] : memref<96x128xf32, #tpu.memory_space<vmem>>, vector<1x128xf32>
    %77 = vector.broadcast %76 : vector<1x128xf32> to vector<16x128xf32>
    %78 = arith.mulf %75, %77 : vector<16x128xf32>
    %79 = arith.addf %74, %78 : vector<16x128xf32>
    %80 = vector.extract_strided_slice %3 {offsets = [4, 0], sizes = [16, 128], strides = [1, 1]} : vector<20x128xf32> to vector<16x128xf32>
    %c22 = arith.constant 22 : index
    %c0_19 = arith.constant 0 : index
    %81 = vector.load %arg2[%c22, %c0_19] : memref<96x128xf32, #tpu.memory_space<vmem>>, vector<1x128xf32>
    %82 = vector.broadcast %81 : vector<1x128xf32> to vector<16x128xf32>
    %83 = arith.mulf %80, %82 : vector<16x128xf32>
    %84 = arith.addf %79, %83 : vector<16x128xf32>
    %c120_i32 = arith.constant 120 : i32
    %85 = tpu.dynamic_rotate %3 by %c120_i32 dim 1 : vector<20x128xf32>, i32 -> vector<20x128xf32>
    %86 = vector.extract_strided_slice %85 {offsets = [0, 0], sizes = [16, 128], strides = [1, 1]} : vector<20x128xf32> to vector<16x128xf32>
    %c3 = arith.constant 3 : index
    %c0_20 = arith.constant 0 : index
    %87 = vector.load %arg2[%c3, %c0_20] : memref<96x128xf32, #tpu.memory_space<vmem>>, vector<1x128xf32>
    %88 = vector.broadcast %87 : vector<1x128xf32> to vector<16x128xf32>
    %89 = arith.mulf %86, %88 : vector<16x128xf32>
    %90 = arith.addf %84, %89 : vector<16x128xf32>
    %91 = vector.extract_strided_slice %85 {offsets = [1, 0], sizes = [16, 128], strides = [1, 1]} : vector<20x128xf32> to vector<16x128xf32>
    %c8 = arith.constant 8 : index
    %c0_21 = arith.constant 0 : index
    %92 = vector.load %arg2[%c8, %c0_21] : memref<96x128xf32, #tpu.memory_space<vmem>>, vector<1x128xf32>
    %93 = vector.broadcast %92 : vector<1x128xf32> to vector<16x128xf32>
    %94 = arith.mulf %91, %93 : vector<16x128xf32>
    %95 = arith.addf %90, %94 : vector<16x128xf32>
    %96 = vector.extract_strided_slice %85 {offsets = [2, 0], sizes = [16, 128], strides = [1, 1]} : vector<20x128xf32> to vector<16x128xf32>
    %c13 = arith.constant 13 : index
    %c0_22 = arith.constant 0 : index
    %97 = vector.load %arg2[%c13, %c0_22] : memref<96x128xf32, #tpu.memory_space<vmem>>, vector<1x128xf32>
    %98 = vector.broadcast %97 : vector<1x128xf32> to vector<16x128xf32>
    %99 = arith.mulf %96, %98 : vector<16x128xf32>
    %100 = arith.addf %95, %99 : vector<16x128xf32>
    %101 = vector.extract_strided_slice %85 {offsets = [3, 0], sizes = [16, 128], strides = [1, 1]} : vector<20x128xf32> to vector<16x128xf32>
    %c18 = arith.constant 18 : index
    %c0_23 = arith.constant 0 : index
    %102 = vector.load %arg2[%c18, %c0_23] : memref<96x128xf32, #tpu.memory_space<vmem>>, vector<1x128xf32>
    %103 = vector.broadcast %102 : vector<1x128xf32> to vector<16x128xf32>
    %104 = arith.mulf %101, %103 : vector<16x128xf32>
    %105 = arith.addf %100, %104 : vector<16x128xf32>
    %106 = vector.extract_strided_slice %85 {offsets = [4, 0], sizes = [16, 128], strides = [1, 1]} : vector<20x128xf32> to vector<16x128xf32>
    %c23 = arith.constant 23 : index
    %c0_24 = arith.constant 0 : index
    %107 = vector.load %arg2[%c23, %c0_24] : memref<96x128xf32, #tpu.memory_space<vmem>>, vector<1x128xf32>
    %108 = vector.broadcast %107 : vector<1x128xf32> to vector<16x128xf32>
    %109 = arith.mulf %106, %108 : vector<16x128xf32>
    %110 = arith.addf %105, %109 : vector<16x128xf32>
    %c112_i32 = arith.constant 112 : i32
    %111 = tpu.dynamic_rotate %3 by %c112_i32 dim 1 : vector<20x128xf32>, i32 -> vector<20x128xf32>
    %112 = vector.extract_strided_slice %111 {offsets = [0, 0], sizes = [16, 128], strides = [1, 1]} : vector<20x128xf32> to vector<16x128xf32>
    %c4 = arith.constant 4 : index
    %c0_25 = arith.constant 0 : index
    %113 = vector.load %arg2[%c4, %c0_25] : memref<96x128xf32, #tpu.memory_space<vmem>>, vector<1x128xf32>
    %114 = vector.broadcast %113 : vector<1x128xf32> to vector<16x128xf32>
    %115 = arith.mulf %112, %114 : vector<16x128xf32>
    %116 = arith.addf %110, %115 : vector<16x128xf32>
    %117 = vector.extract_strided_slice %111 {offsets = [1, 0], sizes = [16, 128], strides = [1, 1]} : vector<20x128xf32> to vector<16x128xf32>
    %c9 = arith.constant 9 : index
    %c0_26 = arith.constant 0 : index
    %118 = vector.load %arg2[%c9, %c0_26] : memref<96x128xf32, #tpu.memory_space<vmem>>, vector<1x128xf32>
    %119 = vector.broadcast %118 : vector<1x128xf32> to vector<16x128xf32>
    %120 = arith.mulf %117, %119 : vector<16x128xf32>
    %121 = arith.addf %116, %120 : vector<16x128xf32>
    %122 = vector.extract_strided_slice %111 {offsets = [2, 0], sizes = [16, 128], strides = [1, 1]} : vector<20x128xf32> to vector<16x128xf32>
    %c14 = arith.constant 14 : index
    %c0_27 = arith.constant 0 : index
    %123 = vector.load %arg2[%c14, %c0_27] : memref<96x128xf32, #tpu.memory_space<vmem>>, vector<1x128xf32>
    %124 = vector.broadcast %123 : vector<1x128xf32> to vector<16x128xf32>
    %125 = arith.mulf %122, %124 : vector<16x128xf32>
    %126 = arith.addf %121, %125 : vector<16x128xf32>
    %127 = vector.extract_strided_slice %111 {offsets = [3, 0], sizes = [16, 128], strides = [1, 1]} : vector<20x128xf32> to vector<16x128xf32>
    %c19 = arith.constant 19 : index
    %c0_28 = arith.constant 0 : index
    %128 = vector.load %arg2[%c19, %c0_28] : memref<96x128xf32, #tpu.memory_space<vmem>>, vector<1x128xf32>
    %129 = vector.broadcast %128 : vector<1x128xf32> to vector<16x128xf32>
    %130 = arith.mulf %127, %129 : vector<16x128xf32>
    %131 = arith.addf %126, %130 : vector<16x128xf32>
    %132 = vector.extract_strided_slice %111 {offsets = [4, 0], sizes = [16, 128], strides = [1, 1]} : vector<20x128xf32> to vector<16x128xf32>
    %c24 = arith.constant 24 : index
    %c0_29 = arith.constant 0 : index
    %133 = vector.load %arg2[%c24, %c0_29] : memref<96x128xf32, #tpu.memory_space<vmem>>, vector<1x128xf32>
    %134 = vector.broadcast %133 : vector<1x128xf32> to vector<16x128xf32>
    %135 = arith.mulf %132, %134 : vector<16x128xf32>
    %136 = arith.addf %131, %135 : vector<16x128xf32>
    %cst_30 = arith.constant 0.000000e+00 : f32
    %137 = vector.broadcast %cst_30 : f32 to vector<9x128xf32>
    %138 = tpu.concatenate %137, %136, %137 in 0 : vector<9x128xf32>, vector<16x128xf32>, vector<9x128xf32> -> vector<34x128xf32>
    %cst_31 = arith.constant 0.000000e+00 : f32
    %139 = vector.broadcast %cst_31 : f32 to vector<16x128xf32>
    %c90 = arith.constant 90 : index
    %c0_32 = arith.constant 0 : index
    %140 = vector.load %arg2[%c90, %c0_32] : memref<96x128xf32, #tpu.memory_space<vmem>>, vector<1x128xf32>
    %141 = vector.broadcast %140 : vector<1x128xf32> to vector<16x128xf32>
    %142 = arith.addf %139, %141 : vector<16x128xf32>
    %c72_i32 = arith.constant 72 : i32
    %143 = tpu.dynamic_rotate %138 by %c72_i32 dim 1 : vector<34x128xf32>, i32 -> vector<34x128xf32>
    %144 = vector.extract_strided_slice %143 {offsets = [0, 0], sizes = [16, 128], strides = [1, 1]} : vector<34x128xf32> to vector<16x128xf32>
    %c25 = arith.constant 25 : index
    %c0_33 = arith.constant 0 : index
    %145 = vector.load %arg2[%c25, %c0_33] : memref<96x128xf32, #tpu.memory_space<vmem>>, vector<1x128xf32>
    %146 = vector.broadcast %145 : vector<1x128xf32> to vector<16x128xf32>
    %147 = arith.mulf %144, %146 : vector<16x128xf32>
    %148 = arith.addf %142, %147 : vector<16x128xf32>
    %149 = vector.extract_strided_slice %143 {offsets = [3, 0], sizes = [16, 128], strides = [1, 1]} : vector<34x128xf32> to vector<16x128xf32>
    %c32 = arith.constant 32 : index
    %c0_34 = arith.constant 0 : index
    %150 = vector.load %arg2[%c32, %c0_34] : memref<96x128xf32, #tpu.memory_space<vmem>>, vector<1x128xf32>
    %151 = vector.broadcast %150 : vector<1x128xf32> to vector<16x128xf32>
    %152 = arith.mulf %149, %151 : vector<16x128xf32>
    %153 = arith.addf %148, %152 : vector<16x128xf32>
    %154 = vector.extract_strided_slice %143 {offsets = [6, 0], sizes = [16, 128], strides = [1, 1]} : vector<34x128xf32> to vector<16x128xf32>
    %c39 = arith.constant 39 : index
    %c0_35 = arith.constant 0 : index
    %155 = vector.load %arg2[%c39, %c0_35] : memref<96x128xf32, #tpu.memory_space<vmem>>, vector<1x128xf32>
    %156 = vector.broadcast %155 : vector<1x128xf32> to vector<16x128xf32>
    %157 = arith.mulf %154, %156 : vector<16x128xf32>
    %158 = arith.addf %153, %157 : vector<16x128xf32>
    %159 = vector.extract_strided_slice %143 {offsets = [9, 0], sizes = [16, 128], strides = [1, 1]} : vector<34x128xf32> to vector<16x128xf32>
    %c46 = arith.constant 46 : index
    %c0_36 = arith.constant 0 : index
    %160 = vector.load %arg2[%c46, %c0_36] : memref<96x128xf32, #tpu.memory_space<vmem>>, vector<1x128xf32>
    %161 = vector.broadcast %160 : vector<1x128xf32> to vector<16x128xf32>
    %162 = arith.mulf %159, %161 : vector<16x128xf32>
    %163 = arith.addf %158, %162 : vector<16x128xf32>
    %164 = vector.extract_strided_slice %143 {offsets = [12, 0], sizes = [16, 128], strides = [1, 1]} : vector<34x128xf32> to vector<16x128xf32>
    %c53 = arith.constant 53 : index
    %c0_37 = arith.constant 0 : index
    %165 = vector.load %arg2[%c53, %c0_37] : memref<96x128xf32, #tpu.memory_space<vmem>>, vector<1x128xf32>
    %166 = vector.broadcast %165 : vector<1x128xf32> to vector<16x128xf32>
    %167 = arith.mulf %164, %166 : vector<16x128xf32>
    %168 = arith.addf %163, %167 : vector<16x128xf32>
    %169 = vector.extract_strided_slice %143 {offsets = [15, 0], sizes = [16, 128], strides = [1, 1]} : vector<34x128xf32> to vector<16x128xf32>
    %c60 = arith.constant 60 : index
    %c0_38 = arith.constant 0 : index
    %170 = vector.load %arg2[%c60, %c0_38] : memref<96x128xf32, #tpu.memory_space<vmem>>, vector<1x128xf32>
    %171 = vector.broadcast %170 : vector<1x128xf32> to vector<16x128xf32>
    %172 = arith.mulf %169, %171 : vector<16x128xf32>
    %173 = arith.addf %168, %172 : vector<16x128xf32>
    %174 = vector.extract_strided_slice %143 {offsets = [18, 0], sizes = [16, 128], strides = [1, 1]} : vector<34x128xf32> to vector<16x128xf32>
    %c67 = arith.constant 67 : index
    %c0_39 = arith.constant 0 : index
    %175 = vector.load %arg2[%c67, %c0_39] : memref<96x128xf32, #tpu.memory_space<vmem>>, vector<1x128xf32>
    %176 = vector.broadcast %175 : vector<1x128xf32> to vector<16x128xf32>
    %177 = arith.mulf %174, %176 : vector<16x128xf32>
    %178 = arith.addf %173, %177 : vector<16x128xf32>
    %c48_i32 = arith.constant 48 : i32
    %179 = tpu.dynamic_rotate %138 by %c48_i32 dim 1 : vector<34x128xf32>, i32 -> vector<34x128xf32>
    %180 = vector.extract_strided_slice %179 {offsets = [0, 0], sizes = [16, 128], strides = [1, 1]} : vector<34x128xf32> to vector<16x128xf32>
    %c26 = arith.constant 26 : index
    %c0_40 = arith.constant 0 : index
    %181 = vector.load %arg2[%c26, %c0_40] : memref<96x128xf32, #tpu.memory_space<vmem>>, vector<1x128xf32>
    %182 = vector.broadcast %181 : vector<1x128xf32> to vector<16x128xf32>
    %183 = arith.mulf %180, %182 : vector<16x128xf32>
    %184 = arith.addf %178, %183 : vector<16x128xf32>
    %185 = vector.extract_strided_slice %179 {offsets = [3, 0], sizes = [16, 128], strides = [1, 1]} : vector<34x128xf32> to vector<16x128xf32>
    %c33 = arith.constant 33 : index
    %c0_41 = arith.constant 0 : index
    %186 = vector.load %arg2[%c33, %c0_41] : memref<96x128xf32, #tpu.memory_space<vmem>>, vector<1x128xf32>
    %187 = vector.broadcast %186 : vector<1x128xf32> to vector<16x128xf32>
    %188 = arith.mulf %185, %187 : vector<16x128xf32>
    %189 = arith.addf %184, %188 : vector<16x128xf32>
    %190 = vector.extract_strided_slice %179 {offsets = [6, 0], sizes = [16, 128], strides = [1, 1]} : vector<34x128xf32> to vector<16x128xf32>
    %c40 = arith.constant 40 : index
    %c0_42 = arith.constant 0 : index
    %191 = vector.load %arg2[%c40, %c0_42] : memref<96x128xf32, #tpu.memory_space<vmem>>, vector<1x128xf32>
    %192 = vector.broadcast %191 : vector<1x128xf32> to vector<16x128xf32>
    %193 = arith.mulf %190, %192 : vector<16x128xf32>
    %194 = arith.addf %189, %193 : vector<16x128xf32>
    %195 = vector.extract_strided_slice %179 {offsets = [9, 0], sizes = [16, 128], strides = [1, 1]} : vector<34x128xf32> to vector<16x128xf32>
    %c47 = arith.constant 47 : index
    %c0_43 = arith.constant 0 : index
    %196 = vector.load %arg2[%c47, %c0_43] : memref<96x128xf32, #tpu.memory_space<vmem>>, vector<1x128xf32>
    %197 = vector.broadcast %196 : vector<1x128xf32> to vector<16x128xf32>
    %198 = arith.mulf %195, %197 : vector<16x128xf32>
    %199 = arith.addf %194, %198 : vector<16x128xf32>
    %200 = vector.extract_strided_slice %179 {offsets = [12, 0], sizes = [16, 128], strides = [1, 1]} : vector<34x128xf32> to vector<16x128xf32>
    %c54 = arith.constant 54 : index
    %c0_44 = arith.constant 0 : index
    %201 = vector.load %arg2[%c54, %c0_44] : memref<96x128xf32, #tpu.memory_space<vmem>>, vector<1x128xf32>
    %202 = vector.broadcast %201 : vector<1x128xf32> to vector<16x128xf32>
    %203 = arith.mulf %200, %202 : vector<16x128xf32>
    %204 = arith.addf %199, %203 : vector<16x128xf32>
    %205 = vector.extract_strided_slice %179 {offsets = [15, 0], sizes = [16, 128], strides = [1, 1]} : vector<34x128xf32> to vector<16x128xf32>
    %c61 = arith.constant 61 : index
    %c0_45 = arith.constant 0 : index
    %206 = vector.load %arg2[%c61, %c0_45] : memref<96x128xf32, #tpu.memory_space<vmem>>, vector<1x128xf32>
    %207 = vector.broadcast %206 : vector<1x128xf32> to vector<16x128xf32>
    %208 = arith.mulf %205, %207 : vector<16x128xf32>
    %209 = arith.addf %204, %208 : vector<16x128xf32>
    %210 = vector.extract_strided_slice %179 {offsets = [18, 0], sizes = [16, 128], strides = [1, 1]} : vector<34x128xf32> to vector<16x128xf32>
    %c68 = arith.constant 68 : index
    %c0_46 = arith.constant 0 : index
    %211 = vector.load %arg2[%c68, %c0_46] : memref<96x128xf32, #tpu.memory_space<vmem>>, vector<1x128xf32>
    %212 = vector.broadcast %211 : vector<1x128xf32> to vector<16x128xf32>
    %213 = arith.mulf %210, %212 : vector<16x128xf32>
    %214 = arith.addf %209, %213 : vector<16x128xf32>
    %c24_i32 = arith.constant 24 : i32
    %215 = tpu.dynamic_rotate %138 by %c24_i32 dim 1 : vector<34x128xf32>, i32 -> vector<34x128xf32>
    %216 = vector.extract_strided_slice %215 {offsets = [0, 0], sizes = [16, 128], strides = [1, 1]} : vector<34x128xf32> to vector<16x128xf32>
    %c27 = arith.constant 27 : index
    %c0_47 = arith.constant 0 : index
    %217 = vector.load %arg2[%c27, %c0_47] : memref<96x128xf32, #tpu.memory_space<vmem>>, vector<1x128xf32>
    %218 = vector.broadcast %217 : vector<1x128xf32> to vector<16x128xf32>
    %219 = arith.mulf %216, %218 : vector<16x128xf32>
    %220 = arith.addf %214, %219 : vector<16x128xf32>
    %221 = vector.extract_strided_slice %215 {offsets = [3, 0], sizes = [16, 128], strides = [1, 1]} : vector<34x128xf32> to vector<16x128xf32>
    %c34 = arith.constant 34 : index
    %c0_48 = arith.constant 0 : index
    %222 = vector.load %arg2[%c34, %c0_48] : memref<96x128xf32, #tpu.memory_space<vmem>>, vector<1x128xf32>
    %223 = vector.broadcast %222 : vector<1x128xf32> to vector<16x128xf32>
    %224 = arith.mulf %221, %223 : vector<16x128xf32>
    %225 = arith.addf %220, %224 : vector<16x128xf32>
    %226 = vector.extract_strided_slice %215 {offsets = [6, 0], sizes = [16, 128], strides = [1, 1]} : vector<34x128xf32> to vector<16x128xf32>
    %c41 = arith.constant 41 : index
    %c0_49 = arith.constant 0 : index
    %227 = vector.load %arg2[%c41, %c0_49] : memref<96x128xf32, #tpu.memory_space<vmem>>, vector<1x128xf32>
    %228 = vector.broadcast %227 : vector<1x128xf32> to vector<16x128xf32>
    %229 = arith.mulf %226, %228 : vector<16x128xf32>
    %230 = arith.addf %225, %229 : vector<16x128xf32>
    %231 = vector.extract_strided_slice %215 {offsets = [9, 0], sizes = [16, 128], strides = [1, 1]} : vector<34x128xf32> to vector<16x128xf32>
    %c48 = arith.constant 48 : index
    %c0_50 = arith.constant 0 : index
    %232 = vector.load %arg2[%c48, %c0_50] : memref<96x128xf32, #tpu.memory_space<vmem>>, vector<1x128xf32>
    %233 = vector.broadcast %232 : vector<1x128xf32> to vector<16x128xf32>
    %234 = arith.mulf %231, %233 : vector<16x128xf32>
    %235 = arith.addf %230, %234 : vector<16x128xf32>
    %236 = vector.extract_strided_slice %215 {offsets = [12, 0], sizes = [16, 128], strides = [1, 1]} : vector<34x128xf32> to vector<16x128xf32>
    %c55 = arith.constant 55 : index
    %c0_51 = arith.constant 0 : index
    %237 = vector.load %arg2[%c55, %c0_51] : memref<96x128xf32, #tpu.memory_space<vmem>>, vector<1x128xf32>
    %238 = vector.broadcast %237 : vector<1x128xf32> to vector<16x128xf32>
    %239 = arith.mulf %236, %238 : vector<16x128xf32>
    %240 = arith.addf %235, %239 : vector<16x128xf32>
    %241 = vector.extract_strided_slice %215 {offsets = [15, 0], sizes = [16, 128], strides = [1, 1]} : vector<34x128xf32> to vector<16x128xf32>
    %c62 = arith.constant 62 : index
    %c0_52 = arith.constant 0 : index
    %242 = vector.load %arg2[%c62, %c0_52] : memref<96x128xf32, #tpu.memory_space<vmem>>, vector<1x128xf32>
    %243 = vector.broadcast %242 : vector<1x128xf32> to vector<16x128xf32>
    %244 = arith.mulf %241, %243 : vector<16x128xf32>
    %245 = arith.addf %240, %244 : vector<16x128xf32>
    %246 = vector.extract_strided_slice %215 {offsets = [18, 0], sizes = [16, 128], strides = [1, 1]} : vector<34x128xf32> to vector<16x128xf32>
    %c69 = arith.constant 69 : index
    %c0_53 = arith.constant 0 : index
    %247 = vector.load %arg2[%c69, %c0_53] : memref<96x128xf32, #tpu.memory_space<vmem>>, vector<1x128xf32>
    %248 = vector.broadcast %247 : vector<1x128xf32> to vector<16x128xf32>
    %249 = arith.mulf %246, %248 : vector<16x128xf32>
    %250 = arith.addf %245, %249 : vector<16x128xf32>
    %251 = vector.extract_strided_slice %138 {offsets = [0, 0], sizes = [16, 128], strides = [1, 1]} : vector<34x128xf32> to vector<16x128xf32>
    %c28 = arith.constant 28 : index
    %c0_54 = arith.constant 0 : index
    %252 = vector.load %arg2[%c28, %c0_54] : memref<96x128xf32, #tpu.memory_space<vmem>>, vector<1x128xf32>
    %253 = vector.broadcast %252 : vector<1x128xf32> to vector<16x128xf32>
    %254 = arith.mulf %251, %253 : vector<16x128xf32>
    %255 = arith.addf %250, %254 : vector<16x128xf32>
    %256 = vector.extract_strided_slice %138 {offsets = [3, 0], sizes = [16, 128], strides = [1, 1]} : vector<34x128xf32> to vector<16x128xf32>
    %c35 = arith.constant 35 : index
    %c0_55 = arith.constant 0 : index
    %257 = vector.load %arg2[%c35, %c0_55] : memref<96x128xf32, #tpu.memory_space<vmem>>, vector<1x128xf32>
    %258 = vector.broadcast %257 : vector<1x128xf32> to vector<16x128xf32>
    %259 = arith.mulf %256, %258 : vector<16x128xf32>
    %260 = arith.addf %255, %259 : vector<16x128xf32>
    %261 = vector.extract_strided_slice %138 {offsets = [6, 0], sizes = [16, 128], strides = [1, 1]} : vector<34x128xf32> to vector<16x128xf32>
    %c42 = arith.constant 42 : index
    %c0_56 = arith.constant 0 : index
    %262 = vector.load %arg2[%c42, %c0_56] : memref<96x128xf32, #tpu.memory_space<vmem>>, vector<1x128xf32>
    %263 = vector.broadcast %262 : vector<1x128xf32> to vector<16x128xf32>
    %264 = arith.mulf %261, %263 : vector<16x128xf32>
    %265 = arith.addf %260, %264 : vector<16x128xf32>
    %266 = vector.extract_strided_slice %138 {offsets = [9, 0], sizes = [16, 128], strides = [1, 1]} : vector<34x128xf32> to vector<16x128xf32>
    %c49 = arith.constant 49 : index
    %c0_57 = arith.constant 0 : index
    %267 = vector.load %arg2[%c49, %c0_57] : memref<96x128xf32, #tpu.memory_space<vmem>>, vector<1x128xf32>
    %268 = vector.broadcast %267 : vector<1x128xf32> to vector<16x128xf32>
    %269 = arith.mulf %266, %268 : vector<16x128xf32>
    %270 = arith.addf %265, %269 : vector<16x128xf32>
    %271 = vector.extract_strided_slice %138 {offsets = [12, 0], sizes = [16, 128], strides = [1, 1]} : vector<34x128xf32> to vector<16x128xf32>
    %c56 = arith.constant 56 : index
    %c0_58 = arith.constant 0 : index
    %272 = vector.load %arg2[%c56, %c0_58] : memref<96x128xf32, #tpu.memory_space<vmem>>, vector<1x128xf32>
    %273 = vector.broadcast %272 : vector<1x128xf32> to vector<16x128xf32>
    %274 = arith.mulf %271, %273 : vector<16x128xf32>
    %275 = arith.addf %270, %274 : vector<16x128xf32>
    %276 = vector.extract_strided_slice %138 {offsets = [15, 0], sizes = [16, 128], strides = [1, 1]} : vector<34x128xf32> to vector<16x128xf32>
    %c63 = arith.constant 63 : index
    %c0_59 = arith.constant 0 : index
    %277 = vector.load %arg2[%c63, %c0_59] : memref<96x128xf32, #tpu.memory_space<vmem>>, vector<1x128xf32>
    %278 = vector.broadcast %277 : vector<1x128xf32> to vector<16x128xf32>
    %279 = arith.mulf %276, %278 : vector<16x128xf32>
    %280 = arith.addf %275, %279 : vector<16x128xf32>
    %281 = vector.extract_strided_slice %138 {offsets = [18, 0], sizes = [16, 128], strides = [1, 1]} : vector<34x128xf32> to vector<16x128xf32>
    %c70 = arith.constant 70 : index
    %c0_60 = arith.constant 0 : index
    %282 = vector.load %arg2[%c70, %c0_60] : memref<96x128xf32, #tpu.memory_space<vmem>>, vector<1x128xf32>
    %283 = vector.broadcast %282 : vector<1x128xf32> to vector<16x128xf32>
    %284 = arith.mulf %281, %283 : vector<16x128xf32>
    %285 = arith.addf %280, %284 : vector<16x128xf32>
    %c104_i32 = arith.constant 104 : i32
    %286 = tpu.dynamic_rotate %138 by %c104_i32 dim 1 : vector<34x128xf32>, i32 -> vector<34x128xf32>
    %287 = vector.extract_strided_slice %286 {offsets = [0, 0], sizes = [16, 128], strides = [1, 1]} : vector<34x128xf32> to vector<16x128xf32>
    %c29 = arith.constant 29 : index
    %c0_61 = arith.constant 0 : index
    %288 = vector.load %arg2[%c29, %c0_61] : memref<96x128xf32, #tpu.memory_space<vmem>>, vector<1x128xf32>
    %289 = vector.broadcast %288 : vector<1x128xf32> to vector<16x128xf32>
    %290 = arith.mulf %287, %289 : vector<16x128xf32>
    %291 = arith.addf %285, %290 : vector<16x128xf32>
    %292 = vector.extract_strided_slice %286 {offsets = [3, 0], sizes = [16, 128], strides = [1, 1]} : vector<34x128xf32> to vector<16x128xf32>
    %c36 = arith.constant 36 : index
    %c0_62 = arith.constant 0 : index
    %293 = vector.load %arg2[%c36, %c0_62] : memref<96x128xf32, #tpu.memory_space<vmem>>, vector<1x128xf32>
    %294 = vector.broadcast %293 : vector<1x128xf32> to vector<16x128xf32>
    %295 = arith.mulf %292, %294 : vector<16x128xf32>
    %296 = arith.addf %291, %295 : vector<16x128xf32>
    %297 = vector.extract_strided_slice %286 {offsets = [6, 0], sizes = [16, 128], strides = [1, 1]} : vector<34x128xf32> to vector<16x128xf32>
    %c43 = arith.constant 43 : index
    %c0_63 = arith.constant 0 : index
    %298 = vector.load %arg2[%c43, %c0_63] : memref<96x128xf32, #tpu.memory_space<vmem>>, vector<1x128xf32>
    %299 = vector.broadcast %298 : vector<1x128xf32> to vector<16x128xf32>
    %300 = arith.mulf %297, %299 : vector<16x128xf32>
    %301 = arith.addf %296, %300 : vector<16x128xf32>
    %302 = vector.extract_strided_slice %286 {offsets = [9, 0], sizes = [16, 128], strides = [1, 1]} : vector<34x128xf32> to vector<16x128xf32>
    %c50 = arith.constant 50 : index
    %c0_64 = arith.constant 0 : index
    %303 = vector.load %arg2[%c50, %c0_64] : memref<96x128xf32, #tpu.memory_space<vmem>>, vector<1x128xf32>
    %304 = vector.broadcast %303 : vector<1x128xf32> to vector<16x128xf32>
    %305 = arith.mulf %302, %304 : vector<16x128xf32>
    %306 = arith.addf %301, %305 : vector<16x128xf32>
    %307 = vector.extract_strided_slice %286 {offsets = [12, 0], sizes = [16, 128], strides = [1, 1]} : vector<34x128xf32> to vector<16x128xf32>
    %c57 = arith.constant 57 : index
    %c0_65 = arith.constant 0 : index
    %308 = vector.load %arg2[%c57, %c0_65] : memref<96x128xf32, #tpu.memory_space<vmem>>, vector<1x128xf32>
    %309 = vector.broadcast %308 : vector<1x128xf32> to vector<16x128xf32>
    %310 = arith.mulf %307, %309 : vector<16x128xf32>
    %311 = arith.addf %306, %310 : vector<16x128xf32>
    %312 = vector.extract_strided_slice %286 {offsets = [15, 0], sizes = [16, 128], strides = [1, 1]} : vector<34x128xf32> to vector<16x128xf32>
    %c64 = arith.constant 64 : index
    %c0_66 = arith.constant 0 : index
    %313 = vector.load %arg2[%c64, %c0_66] : memref<96x128xf32, #tpu.memory_space<vmem>>, vector<1x128xf32>
    %314 = vector.broadcast %313 : vector<1x128xf32> to vector<16x128xf32>
    %315 = arith.mulf %312, %314 : vector<16x128xf32>
    %316 = arith.addf %311, %315 : vector<16x128xf32>
    %317 = vector.extract_strided_slice %286 {offsets = [18, 0], sizes = [16, 128], strides = [1, 1]} : vector<34x128xf32> to vector<16x128xf32>
    %c71 = arith.constant 71 : index
    %c0_67 = arith.constant 0 : index
    %318 = vector.load %arg2[%c71, %c0_67] : memref<96x128xf32, #tpu.memory_space<vmem>>, vector<1x128xf32>
    %319 = vector.broadcast %318 : vector<1x128xf32> to vector<16x128xf32>
    %320 = arith.mulf %317, %319 : vector<16x128xf32>
    %321 = arith.addf %316, %320 : vector<16x128xf32>
    %c80_i32 = arith.constant 80 : i32
    %322 = tpu.dynamic_rotate %138 by %c80_i32 dim 1 : vector<34x128xf32>, i32 -> vector<34x128xf32>
    %323 = vector.extract_strided_slice %322 {offsets = [0, 0], sizes = [16, 128], strides = [1, 1]} : vector<34x128xf32> to vector<16x128xf32>
    %c30 = arith.constant 30 : index
    %c0_68 = arith.constant 0 : index
    %324 = vector.load %arg2[%c30, %c0_68] : memref<96x128xf32, #tpu.memory_space<vmem>>, vector<1x128xf32>
    %325 = vector.broadcast %324 : vector<1x128xf32> to vector<16x128xf32>
    %326 = arith.mulf %323, %325 : vector<16x128xf32>
    %327 = arith.addf %321, %326 : vector<16x128xf32>
    %328 = vector.extract_strided_slice %322 {offsets = [3, 0], sizes = [16, 128], strides = [1, 1]} : vector<34x128xf32> to vector<16x128xf32>
    %c37 = arith.constant 37 : index
    %c0_69 = arith.constant 0 : index
    %329 = vector.load %arg2[%c37, %c0_69] : memref<96x128xf32, #tpu.memory_space<vmem>>, vector<1x128xf32>
    %330 = vector.broadcast %329 : vector<1x128xf32> to vector<16x128xf32>
    %331 = arith.mulf %328, %330 : vector<16x128xf32>
    %332 = arith.addf %327, %331 : vector<16x128xf32>
    %333 = vector.extract_strided_slice %322 {offsets = [6, 0], sizes = [16, 128], strides = [1, 1]} : vector<34x128xf32> to vector<16x128xf32>
    %c44 = arith.constant 44 : index
    %c0_70 = arith.constant 0 : index
    %334 = vector.load %arg2[%c44, %c0_70] : memref<96x128xf32, #tpu.memory_space<vmem>>, vector<1x128xf32>
    %335 = vector.broadcast %334 : vector<1x128xf32> to vector<16x128xf32>
    %336 = arith.mulf %333, %335 : vector<16x128xf32>
    %337 = arith.addf %332, %336 : vector<16x128xf32>
    %338 = vector.extract_strided_slice %322 {offsets = [9, 0], sizes = [16, 128], strides = [1, 1]} : vector<34x128xf32> to vector<16x128xf32>
    %c51 = arith.constant 51 : index
    %c0_71 = arith.constant 0 : index
    %339 = vector.load %arg2[%c51, %c0_71] : memref<96x128xf32, #tpu.memory_space<vmem>>, vector<1x128xf32>
    %340 = vector.broadcast %339 : vector<1x128xf32> to vector<16x128xf32>
    %341 = arith.mulf %338, %340 : vector<16x128xf32>
    %342 = arith.addf %337, %341 : vector<16x128xf32>
    %343 = vector.extract_strided_slice %322 {offsets = [12, 0], sizes = [16, 128], strides = [1, 1]} : vector<34x128xf32> to vector<16x128xf32>
    %c58 = arith.constant 58 : index
    %c0_72 = arith.constant 0 : index
    %344 = vector.load %arg2[%c58, %c0_72] : memref<96x128xf32, #tpu.memory_space<vmem>>, vector<1x128xf32>
    %345 = vector.broadcast %344 : vector<1x128xf32> to vector<16x128xf32>
    %346 = arith.mulf %343, %345 : vector<16x128xf32>
    %347 = arith.addf %342, %346 : vector<16x128xf32>
    %348 = vector.extract_strided_slice %322 {offsets = [15, 0], sizes = [16, 128], strides = [1, 1]} : vector<34x128xf32> to vector<16x128xf32>
    %c65 = arith.constant 65 : index
    %c0_73 = arith.constant 0 : index
    %349 = vector.load %arg2[%c65, %c0_73] : memref<96x128xf32, #tpu.memory_space<vmem>>, vector<1x128xf32>
    %350 = vector.broadcast %349 : vector<1x128xf32> to vector<16x128xf32>
    %351 = arith.mulf %348, %350 : vector<16x128xf32>
    %352 = arith.addf %347, %351 : vector<16x128xf32>
    %353 = vector.extract_strided_slice %322 {offsets = [18, 0], sizes = [16, 128], strides = [1, 1]} : vector<34x128xf32> to vector<16x128xf32>
    %c72 = arith.constant 72 : index
    %c0_74 = arith.constant 0 : index
    %354 = vector.load %arg2[%c72, %c0_74] : memref<96x128xf32, #tpu.memory_space<vmem>>, vector<1x128xf32>
    %355 = vector.broadcast %354 : vector<1x128xf32> to vector<16x128xf32>
    %356 = arith.mulf %353, %355 : vector<16x128xf32>
    %357 = arith.addf %352, %356 : vector<16x128xf32>
    %c56_i32 = arith.constant 56 : i32
    %358 = tpu.dynamic_rotate %138 by %c56_i32 dim 1 : vector<34x128xf32>, i32 -> vector<34x128xf32>
    %359 = vector.extract_strided_slice %358 {offsets = [0, 0], sizes = [16, 128], strides = [1, 1]} : vector<34x128xf32> to vector<16x128xf32>
    %c31 = arith.constant 31 : index
    %c0_75 = arith.constant 0 : index
    %360 = vector.load %arg2[%c31, %c0_75] : memref<96x128xf32, #tpu.memory_space<vmem>>, vector<1x128xf32>
    %361 = vector.broadcast %360 : vector<1x128xf32> to vector<16x128xf32>
    %362 = arith.mulf %359, %361 : vector<16x128xf32>
    %363 = arith.addf %357, %362 : vector<16x128xf32>
    %364 = vector.extract_strided_slice %358 {offsets = [3, 0], sizes = [16, 128], strides = [1, 1]} : vector<34x128xf32> to vector<16x128xf32>
    %c38 = arith.constant 38 : index
    %c0_76 = arith.constant 0 : index
    %365 = vector.load %arg2[%c38, %c0_76] : memref<96x128xf32, #tpu.memory_space<vmem>>, vector<1x128xf32>
    %366 = vector.broadcast %365 : vector<1x128xf32> to vector<16x128xf32>
    %367 = arith.mulf %364, %366 : vector<16x128xf32>
    %368 = arith.addf %363, %367 : vector<16x128xf32>
    %369 = vector.extract_strided_slice %358 {offsets = [6, 0], sizes = [16, 128], strides = [1, 1]} : vector<34x128xf32> to vector<16x128xf32>
    %c45 = arith.constant 45 : index
    %c0_77 = arith.constant 0 : index
    %370 = vector.load %arg2[%c45, %c0_77] : memref<96x128xf32, #tpu.memory_space<vmem>>, vector<1x128xf32>
    %371 = vector.broadcast %370 : vector<1x128xf32> to vector<16x128xf32>
    %372 = arith.mulf %369, %371 : vector<16x128xf32>
    %373 = arith.addf %368, %372 : vector<16x128xf32>
    %374 = vector.extract_strided_slice %358 {offsets = [9, 0], sizes = [16, 128], strides = [1, 1]} : vector<34x128xf32> to vector<16x128xf32>
    %c52 = arith.constant 52 : index
    %c0_78 = arith.constant 0 : index
    %375 = vector.load %arg2[%c52, %c0_78] : memref<96x128xf32, #tpu.memory_space<vmem>>, vector<1x128xf32>
    %376 = vector.broadcast %375 : vector<1x128xf32> to vector<16x128xf32>
    %377 = arith.mulf %374, %376 : vector<16x128xf32>
    %378 = arith.addf %373, %377 : vector<16x128xf32>
    %379 = vector.extract_strided_slice %358 {offsets = [12, 0], sizes = [16, 128], strides = [1, 1]} : vector<34x128xf32> to vector<16x128xf32>
    %c59 = arith.constant 59 : index
    %c0_79 = arith.constant 0 : index
    %380 = vector.load %arg2[%c59, %c0_79] : memref<96x128xf32, #tpu.memory_space<vmem>>, vector<1x128xf32>
    %381 = vector.broadcast %380 : vector<1x128xf32> to vector<16x128xf32>
    %382 = arith.mulf %379, %381 : vector<16x128xf32>
    %383 = arith.addf %378, %382 : vector<16x128xf32>
    %384 = vector.extract_strided_slice %358 {offsets = [15, 0], sizes = [16, 128], strides = [1, 1]} : vector<34x128xf32> to vector<16x128xf32>
    %c66 = arith.constant 66 : index
    %c0_80 = arith.constant 0 : index
    %385 = vector.load %arg2[%c66, %c0_80] : memref<96x128xf32, #tpu.memory_space<vmem>>, vector<1x128xf32>
    %386 = vector.broadcast %385 : vector<1x128xf32> to vector<16x128xf32>
    %387 = arith.mulf %384, %386 : vector<16x128xf32>
    %388 = arith.addf %383, %387 : vector<16x128xf32>
    %389 = vector.extract_strided_slice %358 {offsets = [18, 0], sizes = [16, 128], strides = [1, 1]} : vector<34x128xf32> to vector<16x128xf32>
    %c73 = arith.constant 73 : index
    %c0_81 = arith.constant 0 : index
    %390 = vector.load %arg2[%c73, %c0_81] : memref<96x128xf32, #tpu.memory_space<vmem>>, vector<1x128xf32>
    %391 = vector.broadcast %390 : vector<1x128xf32> to vector<16x128xf32>
    %392 = arith.mulf %389, %391 : vector<16x128xf32>
    %393 = arith.addf %388, %392 : vector<16x128xf32>
    %cst_82 = arith.constant 0.000000e+00 : f32
    %394 = vector.broadcast %cst_82 : f32 to vector<16x128xf32>
    %c91 = arith.constant 91 : index
    %c0_83 = arith.constant 0 : index
    %395 = vector.load %arg2[%c91, %c0_83] : memref<96x128xf32, #tpu.memory_space<vmem>>, vector<1x128xf32>
    %396 = vector.broadcast %395 : vector<1x128xf32> to vector<16x128xf32>
    %397 = arith.addf %394, %396 : vector<16x128xf32>
    %c7_i32 = arith.constant 7 : i32
    %398 = tpu.dynamic_rotate %393 by %c7_i32 dim 1 : vector<16x128xf32>, i32 -> vector<16x128xf32>
    %c74 = arith.constant 74 : index
    %c0_84 = arith.constant 0 : index
    %399 = vector.load %arg2[%c74, %c0_84] : memref<96x128xf32, #tpu.memory_space<vmem>>, vector<1x128xf32>
    %400 = vector.broadcast %399 : vector<1x128xf32> to vector<16x128xf32>
    %401 = arith.mulf %398, %400 : vector<16x128xf32>
    %402 = arith.addf %397, %401 : vector<16x128xf32>
    %c6_i32 = arith.constant 6 : i32
    %403 = tpu.dynamic_rotate %393 by %c6_i32 dim 1 : vector<16x128xf32>, i32 -> vector<16x128xf32>
    %c75 = arith.constant 75 : index
    %c0_85 = arith.constant 0 : index
    %404 = vector.load %arg2[%c75, %c0_85] : memref<96x128xf32, #tpu.memory_space<vmem>>, vector<1x128xf32>
    %405 = vector.broadcast %404 : vector<1x128xf32> to vector<16x128xf32>
    %406 = arith.mulf %403, %405 : vector<16x128xf32>
    %407 = arith.addf %402, %406 : vector<16x128xf32>
    %c5_i32 = arith.constant 5 : i32
    %408 = tpu.dynamic_rotate %393 by %c5_i32 dim 1 : vector<16x128xf32>, i32 -> vector<16x128xf32>
    %c76 = arith.constant 76 : index
    %c0_86 = arith.constant 0 : index
    %409 = vector.load %arg2[%c76, %c0_86] : memref<96x128xf32, #tpu.memory_space<vmem>>, vector<1x128xf32>
    %410 = vector.broadcast %409 : vector<1x128xf32> to vector<16x128xf32>
    %411 = arith.mulf %408, %410 : vector<16x128xf32>
    %412 = arith.addf %407, %411 : vector<16x128xf32>
    %c4_i32 = arith.constant 4 : i32
    %413 = tpu.dynamic_rotate %393 by %c4_i32 dim 1 : vector<16x128xf32>, i32 -> vector<16x128xf32>
    %c77 = arith.constant 77 : index
    %c0_87 = arith.constant 0 : index
    %414 = vector.load %arg2[%c77, %c0_87] : memref<96x128xf32, #tpu.memory_space<vmem>>, vector<1x128xf32>
    %415 = vector.broadcast %414 : vector<1x128xf32> to vector<16x128xf32>
    %416 = arith.mulf %413, %415 : vector<16x128xf32>
    %417 = arith.addf %412, %416 : vector<16x128xf32>
    %c3_i32 = arith.constant 3 : i32
    %418 = tpu.dynamic_rotate %393 by %c3_i32 dim 1 : vector<16x128xf32>, i32 -> vector<16x128xf32>
    %c78 = arith.constant 78 : index
    %c0_88 = arith.constant 0 : index
    %419 = vector.load %arg2[%c78, %c0_88] : memref<96x128xf32, #tpu.memory_space<vmem>>, vector<1x128xf32>
    %420 = vector.broadcast %419 : vector<1x128xf32> to vector<16x128xf32>
    %421 = arith.mulf %418, %420 : vector<16x128xf32>
    %422 = arith.addf %417, %421 : vector<16x128xf32>
    %c2_i32 = arith.constant 2 : i32
    %423 = tpu.dynamic_rotate %393 by %c2_i32 dim 1 : vector<16x128xf32>, i32 -> vector<16x128xf32>
    %c79 = arith.constant 79 : index
    %c0_89 = arith.constant 0 : index
    %424 = vector.load %arg2[%c79, %c0_89] : memref<96x128xf32, #tpu.memory_space<vmem>>, vector<1x128xf32>
    %425 = vector.broadcast %424 : vector<1x128xf32> to vector<16x128xf32>
    %426 = arith.mulf %423, %425 : vector<16x128xf32>
    %427 = arith.addf %422, %426 : vector<16x128xf32>
    %c1_i32 = arith.constant 1 : i32
    %428 = tpu.dynamic_rotate %393 by %c1_i32 dim 1 : vector<16x128xf32>, i32 -> vector<16x128xf32>
    %c80 = arith.constant 80 : index
    %c0_90 = arith.constant 0 : index
    %429 = vector.load %arg2[%c80, %c0_90] : memref<96x128xf32, #tpu.memory_space<vmem>>, vector<1x128xf32>
    %430 = vector.broadcast %429 : vector<1x128xf32> to vector<16x128xf32>
    %431 = arith.mulf %428, %430 : vector<16x128xf32>
    %432 = arith.addf %427, %431 : vector<16x128xf32>
    %c81 = arith.constant 81 : index
    %c0_91 = arith.constant 0 : index
    %433 = vector.load %arg2[%c81, %c0_91] : memref<96x128xf32, #tpu.memory_space<vmem>>, vector<1x128xf32>
    %434 = vector.broadcast %433 : vector<1x128xf32> to vector<16x128xf32>
    %435 = arith.mulf %393, %434 : vector<16x128xf32>
    %436 = arith.addf %432, %435 : vector<16x128xf32>
    %c127_i32 = arith.constant 127 : i32
    %437 = tpu.dynamic_rotate %393 by %c127_i32 dim 1 : vector<16x128xf32>, i32 -> vector<16x128xf32>
    %c82 = arith.constant 82 : index
    %c0_92 = arith.constant 0 : index
    %438 = vector.load %arg2[%c82, %c0_92] : memref<96x128xf32, #tpu.memory_space<vmem>>, vector<1x128xf32>
    %439 = vector.broadcast %438 : vector<1x128xf32> to vector<16x128xf32>
    %440 = arith.mulf %437, %439 : vector<16x128xf32>
    %441 = arith.addf %436, %440 : vector<16x128xf32>
    %c126_i32 = arith.constant 126 : i32
    %442 = tpu.dynamic_rotate %393 by %c126_i32 dim 1 : vector<16x128xf32>, i32 -> vector<16x128xf32>
    %c83 = arith.constant 83 : index
    %c0_93 = arith.constant 0 : index
    %443 = vector.load %arg2[%c83, %c0_93] : memref<96x128xf32, #tpu.memory_space<vmem>>, vector<1x128xf32>
    %444 = vector.broadcast %443 : vector<1x128xf32> to vector<16x128xf32>
    %445 = arith.mulf %442, %444 : vector<16x128xf32>
    %446 = arith.addf %441, %445 : vector<16x128xf32>
    %c125_i32 = arith.constant 125 : i32
    %447 = tpu.dynamic_rotate %393 by %c125_i32 dim 1 : vector<16x128xf32>, i32 -> vector<16x128xf32>
    %c84 = arith.constant 84 : index
    %c0_94 = arith.constant 0 : index
    %448 = vector.load %arg2[%c84, %c0_94] : memref<96x128xf32, #tpu.memory_space<vmem>>, vector<1x128xf32>
    %449 = vector.broadcast %448 : vector<1x128xf32> to vector<16x128xf32>
    %450 = arith.mulf %447, %449 : vector<16x128xf32>
    %451 = arith.addf %446, %450 : vector<16x128xf32>
    %c124_i32 = arith.constant 124 : i32
    %452 = tpu.dynamic_rotate %393 by %c124_i32 dim 1 : vector<16x128xf32>, i32 -> vector<16x128xf32>
    %c85 = arith.constant 85 : index
    %c0_95 = arith.constant 0 : index
    %453 = vector.load %arg2[%c85, %c0_95] : memref<96x128xf32, #tpu.memory_space<vmem>>, vector<1x128xf32>
    %454 = vector.broadcast %453 : vector<1x128xf32> to vector<16x128xf32>
    %455 = arith.mulf %452, %454 : vector<16x128xf32>
    %456 = arith.addf %451, %455 : vector<16x128xf32>
    %c123_i32 = arith.constant 123 : i32
    %457 = tpu.dynamic_rotate %393 by %c123_i32 dim 1 : vector<16x128xf32>, i32 -> vector<16x128xf32>
    %c86 = arith.constant 86 : index
    %c0_96 = arith.constant 0 : index
    %458 = vector.load %arg2[%c86, %c0_96] : memref<96x128xf32, #tpu.memory_space<vmem>>, vector<1x128xf32>
    %459 = vector.broadcast %458 : vector<1x128xf32> to vector<16x128xf32>
    %460 = arith.mulf %457, %459 : vector<16x128xf32>
    %461 = arith.addf %456, %460 : vector<16x128xf32>
    %c122_i32 = arith.constant 122 : i32
    %462 = tpu.dynamic_rotate %393 by %c122_i32 dim 1 : vector<16x128xf32>, i32 -> vector<16x128xf32>
    %c87 = arith.constant 87 : index
    %c0_97 = arith.constant 0 : index
    %463 = vector.load %arg2[%c87, %c0_97] : memref<96x128xf32, #tpu.memory_space<vmem>>, vector<1x128xf32>
    %464 = vector.broadcast %463 : vector<1x128xf32> to vector<16x128xf32>
    %465 = arith.mulf %462, %464 : vector<16x128xf32>
    %466 = arith.addf %461, %465 : vector<16x128xf32>
    %c121_i32 = arith.constant 121 : i32
    %467 = tpu.dynamic_rotate %393 by %c121_i32 dim 1 : vector<16x128xf32>, i32 -> vector<16x128xf32>
    %c88 = arith.constant 88 : index
    %c0_98 = arith.constant 0 : index
    %468 = vector.load %arg2[%c88, %c0_98] : memref<96x128xf32, #tpu.memory_space<vmem>>, vector<1x128xf32>
    %469 = vector.broadcast %468 : vector<1x128xf32> to vector<16x128xf32>
    %470 = arith.mulf %467, %469 : vector<16x128xf32>
    %471 = arith.addf %466, %470 : vector<16x128xf32>
    %472 = arith.mulf %1, %471 : vector<16x128xf32>
    %c0_99 = arith.constant 0 : index
    %c0_100 = arith.constant 0 : index
    %c0_101 = arith.constant 0 : index
    %473 = vector.load %arg3[%c0_99, %c0_100, %c0_101] : memref<1x16x128xf32, #tpu.memory_space<vmem>>, vector<1x16x128xf32>
    %474 = vector.shape_cast %473 : vector<1x16x128xf32> to vector<16x128xf32>
    %475 = vector.shape_cast %472 : vector<16x128xf32> to vector<1x16x128xf32>
    tpu.vector_store %arg3[%c0_99, %c0_100, %c0_101], %475 {strides = array<i32>} : memref<1x16x128xf32, #tpu.memory_space<vmem>>, vector<1x16x128xf32>,
    return
  }
  func.func @transform_0(%arg0: i32) -> (i32, i32, i32) {
    %c0_i32 = arith.constant 0 : i32
    %c0_i32_0 = arith.constant 0 : i32
    %c0_i32_1 = arith.constant 0 : i32
    return %arg0, %c0_i32, %c0_i32_0 : i32, i32, i32
  }
  func.func @transform_1(%arg0: i32) -> (i32, i32) {
    %c0_i32 = arith.constant 0 : i32
    %c0_i32_0 = arith.constant 0 : i32
    %c0_i32_1 = arith.constant 0 : i32
    return %c0_i32, %c0_i32_0 : i32, i32
  }
  func.func @transform_2(%arg0: i32) -> (i32, i32, i32) {
    %c0_i32 = arith.constant 0 : i32
    %c0_i32_0 = arith.constant 0 : i32
    %c0_i32_1 = arith.constant 0 : i32
    return %arg0, %c0_i32, %c0_i32_0 : i32, i32, i32
  }
}

</mosaic_0001>

<bundles_post_ra>
// kernel: tpu_custom_call.1
= control target key start
LH: loop header
LB: loop body
LE: loop exit
PB: predicated region body
PF: predicated region fallthrough
CT: control target
= control target key end

     0   :  { %7 = vsyncpa [#allocation3], 0  ;;  %s2904_s0 = inlined_call_operand.hbm [shape: f32[2,16,128], index: 0, kind: input, shape index: {}]   ;;  %s2905_s1 = inlined_call_operand.hbm [shape: f32[96,128], index: 1, kind: input, shape index: {}]   ;;  %s2906_s2 = inlined_call_operand.hbm [shape: f32[2,16,128], index: 2, kind: output, shape index: {}]  }
   0x1   :  { %9 = vsyncpa [#allocation3 + $0x1], 0 }
   0x2   :  { %10 = vsyncpa [#allocation6], 0 }
   0x3   :  { %11 = vsyncpa [#allocation4], 0 }
   0x4   :  { %13 = vsyncpa [#allocation4 + $0x1], 0  ;;  %s2308_s9 = smov 0   ;;  %s2310_s10 = smov 0  }
   0x5   :  { %s2312_s11 = smov 0   ;;  %s2314_s12 = smov 0  }
   0x6 LB: > { %s2329_s13 = sadd.s32 4294967295, %s2260_s12   ;;  %s1935_s14 = sadd.s32 4294967294, %s2260_s12   ;;  %s2260_s12 = sphi %s2314_s12, %s2926_s12   ;;  %s2256_s11 = sphi %s2312_s11, %s2925_s11   ;;  %s2252_s10 = sphi %s2310_s10, %s2924_s10   ;;  %s2248_s9 = sphi %s2308_s9, %s2923_s9  }
   0x7   : > { %p39_p0 = scmp.ne.s32.totalorder %s2252_s10, %s2248_s9  ;;  %p2907_p1 = scmp.eq.s32.totalorder %s2329_s13, 0 }
   0x8   : > { %p90_p3 = scmp.eq.s32.totalorder %s1935_s14, 1  ;;  %p1936_p5 = scmp.ge.s32.totalorder %s2260_s12, 1 }
   0x9   : > { %p2338_p4 = por %p2907_p1, %p39_p0  ;;  %p97_p7 = scmp.lt.s32.totalorder %s2260_s12, 3 }
   0xa   : > { %p2343_p6 = por %p90_p3, %p39_p0  ;;  %s2262_s18 = smov [#allocation5]  }
   0xb   : > { %s2910_s15 = scalar_select %p2338_p4, 1, 0 }
   0xc   : > { %s2911_s16 = scalar_select %p2343_p6, 1, 0 }
   0xd   : > { %p2348_p8 = pnand %p1936_p5, %p97_p7  ;;  %s109_s19 = sshll.u32 %s2262_s18, 4  ;;  %s2352_s19 = int_to_ptr.vmem [resolvable:$true] %s109_s19 }
   0xe   : > { %s2364_s21 = sadd.s32 1, %s2260_s12   ;;  %s26_s22 = sadd.s32 1, %s2256_s11 }
   0xf   : > { %s2912_s17 = scalar_select %p2348_p8, 1, 0 }
  0x10   : > { %p2053_p9 = pneg %p2348_p8  ;;  %s23_s23 = ssub.s32 %s2260_s12, %s2364_s21 }
  0x11   : > { %s2132_s26 = scalar_lea.hbm %s2905_s1, 1536 }
  0x12   : > { %p2359_p11 = pnand %p2053_p9, %p2907_p1  ;;  %p2133_p12 = scmp.ne.s32.totalorder %s2905_s1, %s2132_s26 }
  0x13   : > { %p2139_p5 = scmp.lt.u32.totalorder %s2132_s26, %s2905_s1 }
  0x14   : > { %p2134_p13 = pneg %p2359_p11 }
  0x16   : > { %p2135_p0 = pnand %p2134_p13, %p2133_p12 }
  0x18   : > { %p2136_p3 = pneg %p2135_p0 }
  0x1a   : > { %p2141_p7 = pnand %p2139_p5, %p2136_p3 }
  0x1c   : > { %2144 = shalt.err (!%p2141_p7)
}
  0x1d   : > { %s2145_s3 = scalar_lea.vmem %s2352_s19, 1536  ;;  %p2153_p2 = scmp.lt.s32.totalorder %s2352_s19, %s2352_s19 }
  0x1e   : > { %p2146_p9 = scmp.ne.s32.totalorder %s2352_s19, %s2145_s3  ;;  %p2154_p6 = scmp.lt.s32.totalorder %s2145_s3, %s2145_s3 }
  0x20   : > { %p2148_p10 = pnand %p2146_p9, %p2134_p13  ;;  %p2155_p4 = por %p2154_p6, %p2153_p2 }
  0x22   : > { %p2149_p1 = pneg %p2148_p10 }
  0x24   : > { %p2156_p8 = pnand %p2155_p4, %p2149_p1 }
  0x26   : > { %2159 = shalt.err (!%p2156_p8)
}
  0x27   : > { %s2263_s4 = smov 128   ;;  %s2264_s5 = smov 8  }
  0x28   : > { %2056 = dma.hbm_to_vmem [thread:$0]  (!%p2359_p11), %s2905_s1, 1536, %s2352_s19, [#allocation6], %s2263_s4, %s2263_s4, %s2264_s5  }
  0x29   : > { %p24_p1 = scmp.eq.s32.totalorder %s23_s23, 0  ;;  %p33_p2 = scmp.ne.s32.totalorder %s2256_s11, %s2252_s10 }
  0x2a   : > { %p34_p4 = scmp.eq.s32.totalorder %s2260_s12, 0  ;;  %p2066_p6 = scmp.lt.s32.totalorder %s2260_s12, 2 }
  0x2b   : > { %s2398_s8 = scalar_select %p24_p1, %s2256_s11, %s26_s22  }
  0x2c   : > { %p35_p8 = por %p34_p4, %p33_p2  ;;  %p2914_p10 = scmp.eq.s32.totalorder %s2329_s13, 1 }
  0x2d   : > { %s123_s18 = sand.u32 1, %s2256_s11   ;;  %s2043_s20 = sshll.u32 %s2260_s12, 8 }
  0x2e   : > { %p2402_p12 = por %p2914_p10, %p33_p2  ;;  %s1939_s24 = sshll.u32 %s123_s18, 4 }
  0x2f   : > { %s2411_s27 = scalar_lea.hbm %s2904_s0, %s2043_s20  ;;  %s127_s19 = scalar_lea.vmem [#allocation2], %s1939_s24 }
  0x30   : > { %s134_s22 = sshll.u32 %s127_s19, 4  ;;  %p2413_p11 = pnand %p2066_p6, %p35_p8  ;;  %s2417_s22 = int_to_ptr.vmem [resolvable:$true] %s134_s22 }
  0x31   : > { %s2419_s28 = scalar_lea.sflag [#allocation3], %s123_s18  ;;  %s2160_s29 = scalar_lea.hbm %s2411_s27, 256 }
  0x32   : > { %p2161_p13 = scmp.ne.s32.totalorder %s2411_s27, %s2160_s29  ;;  %p2162_p0 = pneg %p2413_p11 }
  0x33   : > { %s2165_s6 = scalar_lea.hbm %s2904_s0, 512  ;;  %p2166_p7 = scmp.lt.u32.totalorder %s2411_s27, %s2904_s0 }
  0x34   : > { %p2163_p3 = pnand %p2162_p0, %p2161_p13  ;;  %p2167_p9 = scmp.lt.u32.totalorder %s2165_s6, %s2160_s29 }
  0x35   : > { %p2169_p2 = scmp.lt.u32.totalorder %s2160_s29, %s2411_s27 }
  0x36   : > { %p2164_p5 = pneg %p2163_p3  ;;  %p2168_p1 = por %p2167_p9, %p2166_p7 }
  0x38   : > { %p2170_p4 = por %p2169_p2, %p2168_p1 }
  0x3a   : > { %p2171_p6 = pnand %p2170_p4, %p2164_p5 }
  0x3c   : > { %2174 = shalt.err (!%p2171_p6)
}
  0x3d   : > { %s2175_s18 = scalar_lea.vmem %s2417_s22, 256  ;;  %s2265_s24 = smov [#allocation2]  }
  0x3e   : > { %p2176_p8 = scmp.ne.s32.totalorder %s2417_s22, %s2175_s18  ;;  %s2180_s25 = sshll.u32 %s2265_s24, 4  ;;  %s2181_s25 = int_to_ptr.vmem [resolvable:$false] %s2180_s25 }
  0x3f   : > { %s2182_s26 = scalar_lea.vmem %s2181_s25, 512  ;;  %p2183_p3 = scmp.lt.s32.totalorder %s2417_s22, %s2181_s25 }
  0x40   : > { %p2178_p10 = pnand %p2176_p8, %p2162_p0  ;;  %p2184_p7 = scmp.lt.s32.totalorder %s2182_s26, %s2175_s18 }
  0x42   : > { %p2179_p13 = pneg %p2178_p10  ;;  %p2185_p9 = por %p2184_p7, %p2183_p3 }
  0x44   : > { %p2186_p1 = pnand %p2185_p9, %p2179_p13 }
  0x46   : > { %2189 = shalt.err (!%p2186_p1)
}
  0x47   : > { %2060 = dma.hbm_to_vmem [thread:$0]  (!%p2413_p11), %s2411_s27, 256, %s2417_s22, %s2419_s28, %s2263_s4, %s2263_s4, %s2264_s5  }
  0x48   : > { %p2917_p0 = scmp.ne.s32.totalorder %s2912_s17, 0 }
  0x49   : > { %s2453_s19 = sand.u32 (!%p2917_p0), 1, %s2252_s10   ;;  %p2918_p5 = scmp.ne.s32.totalorder (!%p2917_p0), %s2910_s15, 0 }
  0x4a   : > { %146 = sbr.rel (%p2917_p0) target bundleno = 673 (0x2a1), region = 28  ;;  %s1943_s29 = sshll.u32 (!%p2917_p0), %s2453_s19, 4 }
  0x4b   : > { %s149_s30 = scalar_lea.sflag (!%p2917_p0), [#allocation3], %s2453_s19  ;;  %s2459_s23 = scalar_lea.vmem (!%p2917_p0), [#allocation2], %s1943_s29 }
  0x51   : > { %2235 = dma.done.wait (%p2918_p5), %s149_s30, 256  }
  0x52   : > { %2237 = vsyncadd (%p2918_p5), %s149_s30, 4294967040  ;;  %p2919_p11 = scmp.eq.s32.totalorder %s2329_s13, 0 }
  0x54   : > { %2239 = dma.done.wait (%p2919_p11), [#allocation6], 1536   ;;  %p2920_p2 = pmov %p2919_p11 }
  0x55   : > { %v177_v0 = vld [vmem:[%s2459_s23] sm:$0xff]  ;;  %vm181_vm0 = vcmask 1041408   ;;  %v178_v1 = vld [vmem:[%s2459_s23 + $0x8] sm:$0xff]  ;;  %s2266_s15 = smov 16   ;;  %s2267_s17 = smov 8   ;;  %vm222_vm1 = vcmask 1046528  }
  0x56   : > { %2241 = vsyncadd (%p2920_p2), [#allocation6], 4294965760  ;;  %v182_v2 = vrot.slane %v177_v0, 6  ;;  %v183_v3 = vrot.slane %v178_v1, 6  ;;  %v1958_v7 = vld [vmem:[#allocation5 + $0x7] ss:$0 sm:$0xff] }
  0x57   : > { %s2268_s4 = smov 120   ;;  %s2269_s5 = smov 112   ;;  %v1959_v12 = vld [vmem:[#allocation5 + $0xc] ss:$0 sm:$0xff]  ;;  %v1960_v13 = vld [vmem:[#allocation5 + $0x11] ss:$0 sm:$0xff] }
  0x58   : > { %v2472_v4 = vsel %vm181_vm0, 0.0, %v182_v2  ;;  %v189_v5 = vsel %vm181_vm0, %v183_v3, 0.0  ;;  %v2477_v6 = vsel %vm181_vm0, %v182_v2, %v183_v3  ;;  %v1961_v16 = vld [vmem:[#allocation5 + $0x16] ss:$0 sm:$0xff]  ;;  %vm243_vm2 = vcmask 1045504   ;;  %s2271_s27 = smov 72  }
  0x59   : > { %196 = vrot.lane.b32.xlu0 %v2472_v4, %s2266_s15  ;;  %200 = vrot.lane.b32.xlu1 %v189_v5, %s2266_s15  ;;  %v406_v8 = vmul.f32 %v1958_v7, %v189_v5  ;;  %v405_v10 = vmul.f32 %v1958_v7, %v2477_v6  ;;  %v426_v14 = vmul.f32 %v1959_v12, %v189_v5  ;;  %vm264_vm3 = vcmask 1044480   ;;  %v1947_v44 = vld [vmem:[#allocation5] ss:$0 sm:$0xff]  ;;  %v1948_v45 = vld [vmem:[#allocation5 + $0x5] ss:$0 sm:$0xff]  ;;  %s2272_s22 = smov 48  }
  0x5a   : > { %v446_v15 = vmul.f32 %v1960_v13, %v189_v5  ;;  %v425_v17 = vmul.f32 %v1959_v12, %v2477_v6  ;;  %v466_v19 = vmul.f32 %v1961_v16, %v189_v5  ;;  %v445_v20 = vmul.f32 %v1960_v13, %v2477_v6  ;;  %v1949_v46 = vld [vmem:[#allocation5 + $0xa] ss:$0 sm:$0xff]  ;;  %v1950_v48 = vld [vmem:[#allocation5 + $0xf] ss:$0 sm:$0xff]  ;;  %v1946_v50 = vld [vmem:[#allocation5 + $0x59] ss:$0 sm:$0xff] }
  0x5b   : > { %v413_v9 = vrot.slane %v406_v8, 1  ;;  %v411_v11 = vrot.slane %v405_v10, 1  ;;  %v433_v21 = vrot.slane %v426_v14, 2  ;;  %v404_v24 = vmul.f32 %v1958_v7, %v2472_v4  ;;  %v1951_v52 = vld [vmem:[#allocation5 + $0x14] ss:$0 sm:$0xff]  ;;  %s2273_s28 = smov 24  }
  0x5c   : > { %v453_v22 = vrot.slane %v446_v15, 3  ;;  %v431_v23 = vrot.slane %v425_v17, 2  ;;  %v473_v25 = vrot.slane %v466_v19, 4  ;;  %v451_v26 = vrot.slane %v445_v20, 3  ;;  %v1954_v17 = vld [vmem:[#allocation5 + $0xb] ss:$0 sm:$0xff] }
  0x5d   : > { %198 = vrot.lane.b32.xlu0 %v2477_v6, %s2266_s15  ;;  %295 = vrot.lane.b32.xlu1 %v2472_v4, %s2267_s17  ;;  %v2491_v18 = vsel %vm222_vm1, %v411_v11, %v413_v9  ;;  %v465_v27 = vmul.f32 %v1961_v16, %v2477_v6  ;;  %v410_v29 = vrot.slane %v404_v24, 1  ;;  %v424_v30 = vmul.f32 %v1959_v12, %v2472_v4  ;;  %v1953_v12 = vld [vmem:[#allocation5 + $0x6] ss:$0 sm:$0xff]  ;;  %s2274_s3 = smov 104   ;;  %s2275_s6 = smov 80  }
  0x5e   : > { %v2498_v28 = vsel %vm243_vm2, %v431_v23, %v433_v21  ;;  %v2502_v31 = vsel %vm264_vm3, %v451_v26, %v453_v22  ;;  %vm285_vm4 = vcmask 1043456   ;;  %v444_v34 = vmul.f32 %v1960_v13, %v2472_v4  ;;  %s2276_s7 = smov 56   ;;  %s2277_s20 = smov 7  }
  0x5f   : > { %v471_v32 = vrot.slane %v465_v27, 4  ;;  %v430_v33 = vrot.slane %v424_v30, 2  ;;  %v2506_v35 = vsel %vm222_vm1, %v410_v29, %v411_v11  ;;  %v464_v37 = vmul.f32 %v1961_v16, %v2472_v4  ;;  %v1952_v11 = vld [vmem:[#allocation5 + $0x1] ss:$0 sm:$0xff]  ;;  %s2278_s18 = smov 6   ;;  %s2279_s24 = smov 5  }
  0x60   : > { %v450_v38 = vrot.slane %v444_v34, 3  ;;  %v2270_v43 = vmov 0.0   ;;  %vm671_vm5 = vcmask 1040384   ;;  %s2280_s25 = smov 4   ;;  %s2281_s26 = smov 3  }
  0x61   : > { %297 = vrot.lane.b32.xlu0 %v2477_v6, %s2267_s17  ;;  %299 = vrot.lane.b32.xlu1 %v189_v5, %s2267_s17  ;;  %v2509_v36 = vsel %vm285_vm4, %v471_v32, %v473_v25  ;;  %v2513_v39 = vsel %vm243_vm2, %v430_v33, %v431_v23  ;;  %v470_v40 = vrot.slane %v464_v37, 4  ;;  %v1955_v23 = vld [vmem:[#allocation5 + $0x10] ss:$0 sm:$0xff]  ;;  %s2282_s30 = smov 2   ;;  %s2283_s15 = smov 1  }
  0x62   : > { %v2516_v41 = vsel %vm264_vm3, %v450_v38, %v451_v26 }
  0x63   : > { %v2519_v42 = vsel %vm285_vm4, %v470_v40, %v471_v32 }
  0x65   : > { %481 = vrot.lane.b32.xlu1 %v2477_v6, %s2268_s4  ;;  %479 = vrot.lane.b32.xlu0 %v2472_v4, %s2268_s4 }
  0x69   : > { %483 = vrot.lane.b32.xlu0 %v189_v5, %s2268_s4  ;;  %574 = vrot.lane.b32.xlu1 %v2472_v4, %s2269_s5  ;;  %s2284_s4 = smov 127  }
  0x6d   : > { %576 = vrot.lane.b32.xlu0 %v2477_v6, %s2269_s5  ;;  %578 = vrot.lane.b32.xlu1 %v189_v5, %s2269_s5  ;;  %s2285_s5 = smov 126  }
  0x71   : > { %686 = vrot.lane.b32.xlu0 %v2270_v43, %s2271_s27 }
  0xcb   : > { %v197_v47 = vpop.permute.xlu0 %196  ;;  %v201_v49 = vpop.permute.xlu1 %200 }
  0xcc   : > { %v207_v51 = vmul.f32 %v1947_v44, %v197_v47  ;;  %v216_v53 = vmul.f32 %v1948_v45, %v197_v47  ;;  %v218_v54 = vmul.f32 %v1948_v45, %v201_v49  ;;  %v237_v55 = vmul.f32 %v1949_v46, %v197_v47 }
  0xcd   : > { %v239_v56 = vmul.f32 %v1949_v46, %v201_v49  ;;  %v258_v57 = vmul.f32 %v1950_v48, %v197_v47  ;;  %v260_v58 = vmul.f32 %v1950_v48, %v201_v49  ;;  %v279_v62 = vmul.f32 %v1951_v52, %v197_v47 }
  0xce   : > { %v209_v59 = vadd.f32 %v1946_v50, %v207_v51  ;;  %v223_v60 = vrot.slane %v216_v53, 1  ;;  %v226_v61 = vrot.slane %v218_v54, 1  ;;  %v281_v1 = vmul.f32 %v1951_v52, %v201_v49  ;;  %v1956_v51 = vld [vmem:[#allocation5 + $0x15] ss:$0 sm:$0xff] }
  0xcf   : > { %v199_v63 = vpop.permute.xlu0 %198  ;;  %v296_v0 = vpop.permute.xlu1 %295  ;;  %v244_v7 = vrot.slane %v237_v55, 2  ;;  %v247_v8 = vrot.slane %v239_v56, 2  ;;  %v265_v13 = vrot.slane %v258_v57, 3  ;;  %v268_v19 = vrot.slane %v260_v58, 3 }
  0xd0   : > { %v208_v2 = vmul.f32 %v1947_v44, %v199_v63  ;;  %v217_v3 = vmul.f32 %v1948_v45, %v199_v63  ;;  %v238_v5 = vmul.f32 %v1949_v46, %v199_v63  ;;  %v259_v9 = vmul.f32 %v1950_v48, %v199_v63 }
  0xd1   : > { %v280_v10 = vmul.f32 %v1951_v52, %v199_v63  ;;  %v286_v20 = vrot.slane %v279_v62, 4  ;;  %v289_v24 = vrot.slane %v281_v1, 4  ;;  %v306_v27 = vmul.f32 %v1952_v11, %v296_v0 }
  0xd2   : > { %v210_v14 = vadd.f32 %v1946_v50, %v208_v2  ;;  %v224_v15 = vrot.slane %v217_v3, 1  ;;  %v245_v16 = vrot.slane %v238_v5, 2  ;;  %v266_v21 = vrot.slane %v259_v9, 3 }
  0xd3   : > { %v287_v22 = vrot.slane %v280_v10, 4  ;;  %v298_v32 = vpop.permute.xlu0 %297  ;;  %v315_v33 = vmul.f32 %v1953_v12, %v296_v0  ;;  %v335_v34 = vmul.f32 %v1954_v17, %v296_v0  ;;  %v300_v37 = vpop.permute.xlu1 %299  ;;  %v355_v45 = vmul.f32 %v1955_v23, %v296_v0 }
  0xd4   : > { %v225_v25 = vsel %vm222_vm1, %v223_v60, %v224_v15  ;;  %v227_v26 = vsel %vm222_vm1, %v224_v15, %v226_v61  ;;  %v246_v38 = vsel %vm243_vm2, %v244_v7, %v245_v16  ;;  %v248_v40 = vsel %vm243_vm2, %v245_v16, %v247_v8 }
  0xd5   : > { %v230_v29 = vadd.f32 %v225_v25, %v209_v59  ;;  %v231_v30 = vadd.f32 %v227_v26, %v210_v14  ;;  %v267_v44 = vsel %vm264_vm3, %v265_v13, %v266_v21  ;;  %v269_v48 = vsel %vm264_vm3, %v266_v21, %v268_v19 }
  0xd6   : > { %v288_v49 = vsel %vm285_vm4, %v286_v20, %v287_v22  ;;  %v307_v50 = vmul.f32 %v1952_v11, %v298_v32  ;;  %v316_v52 = vmul.f32 %v1953_v12, %v298_v32  ;;  %v317_v53 = vmul.f32 %v1953_v12, %v300_v37 }
  0xd7   : > { %v251_v46 = vadd.f32 %v246_v38, %v230_v29  ;;  %v252_v47 = vadd.f32 %v248_v40, %v231_v30  ;;  %v336_v54 = vmul.f32 %v1954_v17, %v298_v32  ;;  %v321_v57 = vrot.slane %v315_v33, 1 }
  0xd8   : > { %v337_v58 = vmul.f32 %v1954_v17, %v300_v37  ;;  %v290_v59 = vsel %vm285_vm4, %v287_v22, %v289_v24  ;;  %v322_v60 = vrot.slane %v316_v52, 1  ;;  %v324_v61 = vrot.slane %v317_v53, 1  ;;  %v480_v22 = vpop.permute.xlu0 %479  ;;  %v1962_v53 = vld [vmem:[#allocation5 + $0x3] ss:$0 sm:$0xff] }
  0xd9   : > { %v272_v55 = vadd.f32 %v267_v44, %v251_v46  ;;  %v273_v56 = vadd.f32 %v269_v48, %v252_v47  ;;  %v356_v62 = vmul.f32 %v1955_v23, %v298_v32  ;;  %v375_v2 = vmul.f32 %v1956_v51, %v296_v0  ;;  %v1957_v0 = vld [vmem:[#allocation5 + $0x2] ss:$0 sm:$0xff]  ;;  %v1963_v48 = vld [vmem:[#allocation5 + $0x8] ss:$0 sm:$0xff] }
  0xda   : > { %v357_v3 = vmul.f32 %v1955_v23, %v300_v37  ;;  %v341_v5 = vrot.slane %v335_v34, 2  ;;  %v325_v7 = vsel %vm222_vm1, %v322_v60, %v324_v61  ;;  %v342_v8 = vrot.slane %v336_v54, 2  ;;  %v1965_v54 = vld [vmem:[#allocation5 + $0x12] ss:$0 sm:$0xff] }
  0xdb   : > { %v293_v63 = vadd.f32 %v288_v49, %v272_v55  ;;  %v294_v1 = vadd.f32 %v290_v59, %v273_v56  ;;  %v344_v9 = vrot.slane %v337_v58, 2  ;;  %v361_v12 = vrot.slane %v355_v45, 3  ;;  %v482_v45 = vpop.permute.xlu1 %481 }
  0xdc   : > { %v323_v13 = vsel %vm222_vm1, %v321_v57, %v322_v60  ;;  %v362_v14 = vrot.slane %v356_v62, 3  ;;  %v364_v15 = vrot.slane %v357_v3, 3  ;;  %v376_v16 = vmul.f32 %v1956_v51, %v298_v32  ;;  %v484_v49 = vpop.permute.xlu0 %483  ;;  %v1966_v57 = vld [vmem:[#allocation5 + $0x17] ss:$0 sm:$0xff] }
  0xdd   : > { %v308_v10 = vadd.f32 %v306_v27, %v293_v63  ;;  %v309_v11 = vadd.f32 %v307_v50, %v294_v1  ;;  %v377_v17 = vmul.f32 %v1956_v51, %v300_v37  ;;  %v381_v19 = vrot.slane %v375_v2, 4  ;;  %v1964_v50 = vld [vmem:[#allocation5 + $0xd] ss:$0 sm:$0xff] }
  0xde   : > { %v343_v23 = vsel %vm243_vm2, %v341_v5, %v342_v8  ;;  %v345_v24 = vsel %vm243_vm2, %v342_v8, %v344_v9  ;;  %v382_v25 = vrot.slane %v376_v16, 4  ;;  %v363_v30 = vsel %vm264_vm3, %v361_v12, %v362_v14 }
  0xdf   : > { %v328_v20 = vadd.f32 %v323_v13, %v308_v10  ;;  %v329_v21 = vadd.f32 %v325_v7, %v309_v11  ;;  %v384_v26 = vrot.slane %v377_v17, 4  ;;  %v365_v33 = vsel %vm264_vm3, %v362_v14, %v364_v15  ;;  %v2541_v58 = vpop.permute.xlu1 %574 }
  0xe0   : > { %v395_v37 = vmul.f32 %v1957_v0, %v2472_v4  ;;  %v396_v38 = vmul.f32 %v1957_v0, %v2477_v6  ;;  %v383_v40 = vsel %vm285_vm4, %v381_v19, %v382_v25  ;;  %v499_v55 = vmul.f32 %v1963_v48, %v480_v22 }
  0xe1   : > { %v348_v27 = vadd.f32 %v343_v23, %v328_v20  ;;  %v349_v29 = vadd.f32 %v345_v24, %v329_v21  ;;  %v385_v44 = vsel %vm285_vm4, %v382_v25, %v384_v26  ;;  %v500_v56 = vmul.f32 %v1963_v48, %v482_v45  ;;  %v577_v24 = vpop.permute.xlu0 %576 }
  0xe2   : > { %v501_v4 = vmul.f32 %v1963_v48, %v484_v49  ;;  %v519_v60 = vmul.f32 %v1964_v50, %v480_v22  ;;  %v520_v61 = vmul.f32 %v1964_v50, %v482_v45  ;;  %v491_v62 = vmul.f32 %v1962_v53, %v482_v45  ;;  %v1970_v48 = vld [vmem:[#allocation5 + $0x13] ss:$0 sm:$0xff] }
  0xe3   : > { %v368_v34 = vadd.f32 %v363_v30, %v348_v27  ;;  %v369_v32 = vadd.f32 %v365_v33, %v349_v29  ;;  %v490_v63 = vmul.f32 %v1962_v53, %v480_v22  ;;  %v539_v1 = vmul.f32 %v1965_v54, %v480_v22  ;;  %v579_v20 = vpop.permute.xlu1 %578  ;;  %v1967_v27 = vld [vmem:[#allocation5 + $0x4] ss:$0 sm:$0xff] }
  0xe4   : > { %v540_v2 = vmul.f32 %v1965_v54, %v482_v45  ;;  %v559_v7 = vmul.f32 %v1966_v57, %v480_v22  ;;  %v560_v8 = vmul.f32 %v1966_v57, %v482_v45  ;;  %v505_v9 = vrot.slane %v499_v55, 1 }
  0xe5   : > { %v388_v46 = vadd.f32 %v383_v40, %v368_v34  ;;  %v389_v47 = vadd.f32 %v385_v44, %v369_v32  ;;  %v506_v10 = vrot.slane %v500_v56, 1  ;;  %v508_v11 = vrot.slane %v501_v4, 1 }
  0xe6   : > { %v521_v12 = vmul.f32 %v1964_v50, %v484_v49  ;;  %v525_v13 = vrot.slane %v519_v60, 2  ;;  %v526_v14 = vrot.slane %v520_v61, 2  ;;  %v545_v15 = vrot.slane %v539_v1, 3 }
  0xe7   : > { %v397_v51 = vadd.f32 %v395_v37, %v388_v46  ;;  %v398_v52 = vadd.f32 %v396_v38, %v389_v47  ;;  %v546_v16 = vrot.slane %v540_v2, 3  ;;  %v541_v17 = vmul.f32 %v1965_v54, %v484_v49 }
  0xe8   : > { %v561_v19 = vmul.f32 %v1966_v57, %v484_v49  ;;  %v565_v21 = vrot.slane %v559_v7, 4  ;;  %v566_v22 = vrot.slane %v560_v8, 4  ;;  %v509_v0 = vsel %vm222_vm1, %v506_v10, %v508_v11 }
  0xe9   : > { %v418_v6 = vadd.f32 %v2491_v18, %v398_v52  ;;  %v417_v59 = vadd.f32 %v2506_v35, %v397_v51  ;;  %v528_v23 = vrot.slane %v521_v12, 2  ;;  %v507_v26 = vsel %vm222_vm1, %v505_v9, %v506_v10  ;;  %v1971_v52 = vld [vmem:[#allocation5 + $0x18] ss:$0 sm:$0xff] }
  0xea   : > { %v527_v30 = vsel %vm243_vm2, %v525_v13, %v526_v14  ;;  %v547_v33 = vsel %vm264_vm3, %v545_v15, %v546_v16  ;;  %v568_v34 = vrot.slane %v561_v19, 4  ;;  %v567_v38 = vsel %vm285_vm4, %v565_v21, %v566_v22 }
  0xeb   : > { %v438_v3 = vadd.f32 %v2498_v28, %v418_v6  ;;  %v437_v5 = vadd.f32 %v2513_v39, %v417_v59  ;;  %v529_v44 = vsel %vm243_vm2, %v526_v14, %v528_v23  ;;  %v585_v45 = vmul.f32 %v1967_v27, %v2541_v58 }
  0xec   : > { %v586_v46 = vmul.f32 %v1967_v27, %v577_v24  ;;  %v569_v55 = vsel %vm285_vm4, %v566_v22, %v568_v34  ;;  %v634_v59 = vmul.f32 %v1970_v48, %v2541_v58  ;;  %v636_v1 = vmul.f32 %v1970_v48, %v579_v20  ;;  %v1997_v34 = vld [vmem:[#allocation5 + $0x31] ss:$0 sm:$0xff] }
  0xed   : > { %v458_v18 = vadd.f32 %v2502_v31, %v438_v3  ;;  %v457_v35 = vadd.f32 %v2516_v41, %v437_v5  ;;  %v1968_v31 = vld [vmem:[#allocation5 + $0x9] ss:$0 sm:$0xff]  ;;  %v655_v10 = vmul.f32 %v1971_v52, %v577_v24  ;;  %v656_v11 = vmul.f32 %v1971_v52, %v579_v20 }
  0xee   : > { %v596_v29 = vmul.f32 %v1968_v31, %v579_v20  ;;  %v595_v40 = vmul.f32 %v1968_v31, %v577_v24  ;;  %v594_v47 = vmul.f32 %v1968_v31, %v2541_v58  ;;  %v643_v15 = vrot.slane %v636_v1, 3 }
  0xef   : > { %v478_v28 = vadd.f32 %v2509_v36, %v458_v18  ;;  %v477_v39 = vadd.f32 %v2519_v42, %v457_v35  ;;  %v548_v36 = vrot.slane %v541_v17, 3  ;;  %v1969_v42 = vld [vmem:[#allocation5 + $0xe] ss:$0 sm:$0xff]  ;;  %v640_v35 = vrot.slane %v634_v59, 3 }
  0xf0   : > { %v614_v51 = vmul.f32 %v1969_v42, %v2541_v58  ;;  %v603_v53 = vrot.slane %v596_v29, 1  ;;  %v615_v56 = vmul.f32 %v1969_v42, %v577_v24  ;;  %v616_v57 = vmul.f32 %v1969_v42, %v579_v20 }
  0xf1   : > { %v493_v25 = vadd.f32 %v491_v62, %v478_v28  ;;  %v492_v41 = vadd.f32 %v490_v63, %v477_v39  ;;  %v549_v54 = vsel %vm264_vm3, %v546_v16, %v548_v36  ;;  %v601_v60 = vrot.slane %v595_v40, 1  ;;  %v2574_v36 = vld [vmem:[#allocation5 + $0x2a] ss:$0 sm:$0xff] }
  0xf2   : > { %v600_v61 = vrot.slane %v594_v47, 1  ;;  %v654_v62 = vmul.f32 %v1971_v52, %v2541_v58  ;;  %v635_v63 = vmul.f32 %v1970_v48, %v577_v24  ;;  %v620_v5 = vrot.slane %v614_v51, 2 }
  0xf3   : > { %v512_v32 = vadd.f32 %v507_v26, %v492_v41  ;;  %v513_v37 = vadd.f32 %v509_v0, %v493_v25  ;;  %v604_v7 = vsel %vm222_vm1, %v601_v60, %v603_v53  ;;  %v621_v8 = vrot.slane %v615_v56, 2  ;;  %v2606_v53 = vld [vmem:[#allocation5 + $0x46] ss:$0 sm:$0xff] }
  0xf4   : > { %v623_v9 = vrot.slane %v616_v57, 2  ;;  %v602_v13 = vsel %vm222_vm1, %v600_v61, %v601_v60  ;;  %v641_v14 = vrot.slane %v635_v63, 3  ;;  %v660_v16 = vrot.slane %v654_v62, 4 }
  0xf5   : > { %v532_v49 = vadd.f32 %v527_v30, %v512_v32  ;;  %v533_v50 = vadd.f32 %v529_v44, %v513_v37  ;;  %v622_v19 = vsel %vm243_vm2, %v620_v5, %v621_v8  ;;  %v661_v39 = vrot.slane %v655_v10, 4 }
  0xf6   : > { %v624_v28 = vsel %vm243_vm2, %v621_v8, %v623_v9  ;;  %v663_v21 = vrot.slane %v656_v11, 4  ;;  %v642_v20 = vsel %vm264_vm3, %v640_v35, %v641_v14  ;;  %v644_v23 = vsel %vm264_vm3, %v641_v14, %v643_v15 }
  0xf7   : > { %v553_v4 = vadd.f32 %v549_v54, %v533_v50  ;;  %v552_v6 = vadd.f32 %v547_v33, %v532_v49  ;;  %v662_v25 = vsel %vm285_vm4, %v660_v16, %v661_v39  ;;  %v2572_v33 = vld [vmem:[#allocation5 + $0x23] ss:$0 sm:$0xff] }
  0xf8   : > { %v664_v41 = vsel %vm285_vm4, %v661_v39, %v663_v21  ;;  %v1974_v39 = vld [vmem:[#allocation5 + $0x20] ss:$0 sm:$0xff]  ;;  %v687_v21 = vpop.permute.xlu0 %686 }
  0xf9   : > { %v573_v2 = vadd.f32 %v569_v55, %v553_v4  ;;  %v572_v3 = vadd.f32 %v567_v38, %v552_v6  ;;  %v1998_v38 = vld [vmem:[#allocation5 + $0x38] ss:$0 sm:$0xff] }
  0xfb   : > { %v587_v12 = vadd.f32 %v585_v45, %v572_v3  ;;  %v588_v18 = vadd.f32 %v586_v46, %v573_v2  ;;  %v1999_v45 = vld [vmem:[#allocation5 + $0x3f] ss:$0 sm:$0xff] }
  0xfd   : > { %v607_v58 = vadd.f32 %v602_v13, %v587_v12  ;;  %v608_v17 = vadd.f32 %v604_v7, %v588_v18 }
  0xff   : > { %v627_v22 = vadd.f32 %v622_v19, %v607_v58  ;;  %v628_v0 = vadd.f32 %v624_v28, %v608_v17  ;;  %v1973_v28 = vld [vmem:[#allocation5 + $0x19] ss:$0 sm:$0xff] }
 0x101   : > { %v647_v24 = vadd.f32 %v642_v20, %v627_v22  ;;  %v648_v31 = vadd.f32 %v644_v23, %v628_v0  ;;  %v1975_v22 = vld [vmem:[#allocation5 + $0x27] ss:$0 sm:$0xff]  ;;  %v699_v0 = vmul.f32 %v1973_v28, %v687_v21  ;;  %v708_v20 = vmul.f32 %v1974_v39, %v687_v21  ;;  %v1972_v23 = vld [vmem:[#allocation5 + $0x5a] ss:$0 sm:$0xff] }
 0x103   : > { %v667_v26 = vadd.f32 %v662_v25, %v647_v24  ;;  %v668_v27 = vadd.f32 %v664_v41, %v648_v31  ;;  %v1979_v24 = vld [vmem:[#allocation5 + $0x43] ss:$0 sm:$0xff]  ;;  %v728_v31 = vmul.f32 %v1975_v22, %v687_v21  ;;  %v1976_v25 = vld [vmem:[#allocation5 + $0x2e] ss:$0 sm:$0xff]  ;;  %v1977_v41 = vld [vmem:[#allocation5 + $0x35] ss:$0 sm:$0xff] }
 0x105   : > { %v672_v29 = vrot.slane %v667_v26, 7  ;;  %v673_v30 = vrot.slane %v668_v27, 7  ;;  %v2677_v26 = vmul.f32 0.0, %v2572_v33  ;;  %v714_v27 = vrot.slane %v708_v20, 3 }
 0x107   : > { %v2577_v42 = vsel %vm671_vm5, %v672_v29, %v673_v30  ;;  %v2580_v32 = vsel %vm671_vm5, 0.0, %v672_v29  ;;  %v2583_v37 = vsel %vm671_vm5, %v673_v30, 0.0  ;;  %v810_v29 = vmul.f32 %v1979_v24, %v687_v21 }
 0x108   : > { %688 = vrot.lane.b32.xlu1 %v2580_v32, %s2271_s27  ;;  %690 = vrot.lane.b32.xlu0 %v2577_v42, %s2271_s27  ;;  %v2591_v40 = vmul.f32 %v2572_v33, %v2580_v32  ;;  %v2595_v44 = vmul.f32 %v2574_v36, %v2580_v32  ;;  %v1113_v46 = vmul.f32 %v2572_v33, %v2577_v42 }
 0x109   : > { %v1133_v47 = vmul.f32 %v2574_v36, %v2577_v42  ;;  %v1152_v48 = vmul.f32 %v1997_v34, %v2577_v42  ;;  %v1153_v49 = vmul.f32 %v1997_v34, %v2583_v37  ;;  %v1151_v50 = vmul.f32 %v1997_v34, %v2580_v32 }
 0x10a   : > { %v1171_v51 = vmul.f32 %v1998_v38, %v2580_v32  ;;  %v1173_v52 = vmul.f32 %v1998_v38, %v2583_v37  ;;  %v1191_v54 = vmul.f32 %v1999_v45, %v2580_v32  ;;  %v1193_v55 = vmul.f32 %v1999_v45, %v2583_v37 }
 0x10b   : > { %v1172_v56 = vmul.f32 %v1998_v38, %v2577_v42  ;;  %v1192_v57 = vmul.f32 %v1999_v45, %v2577_v42  ;;  %v1118_v4 = vrot.slane %v2591_v40, 3  ;;  %v1138_v6 = vrot.slane %v2595_v44, 6 }
 0x10c   : > { %692 = vrot.lane.b32.xlu1 %v2583_v37, %s2271_s27  ;;  %823 = vrot.lane.b32.xlu0 %v2270_v43, %s2272_s22  ;;  %v1120_v59 = vrot.slane %v1113_v46, 3  ;;  %v1140_v60 = vrot.slane %v1133_v47, 6  ;;  %v1158_v61 = vrot.slane %v1152_v48, 1  ;;  %v1160_v62 = vrot.slane %v1153_v49, 1  ;;  %s2286_s27 = smov 125  }
 0x10d   : > { %v1157_v63 = vrot.slane %v1151_v50, 1  ;;  %v2619_v1 = vmul.f32 %v2606_v53, %v2583_v37  ;;  %v1177_v5 = vrot.slane %v1171_v51, 4  ;;  %v1180_v8 = vrot.slane %v1173_v52, 4  ;;  %v1978_v51 = vld [vmem:[#allocation5 + $0x3c] ss:$0 sm:$0xff] }
 0x10e   : > { %v2624_v2 = vsel %vm264_vm3, %v1118_v4, %v1120_v59  ;;  %v2629_v3 = vsel %vm181_vm0, %v1138_v6, %v1140_v60  ;;  %v2632_v7 = vsel %vm222_vm1, %v1158_v61, %v1160_v62  ;;  %v1197_v9 = vrot.slane %v1191_v54, 7 }
 0x10f   : > { %v1200_v10 = vrot.slane %v1193_v55, 7  ;;  %v2637_v11 = vsel %vm222_vm1, %v1157_v63, %v1158_v61  ;;  %v1178_v12 = vrot.slane %v1172_v56, 4  ;;  %v1198_v18 = vrot.slane %v1192_v57, 7 }
 0x110   : > { %825 = vrot.lane.b32.xlu1 %v2580_v32, %s2272_s22  ;;  %827 = vrot.lane.b32.xlu0 %v2577_v42, %s2272_s22  ;;  %v1218_v35 = vrot.slane %v2619_v1, 2  ;;  %v1211_v13 = vmul.f32 %v2606_v53, %v2577_v42  ;;  %v734_v47 = vrot.slane %v728_v31, 6 }
 0x111   : > { %v2643_v14 = vsel %vm285_vm4, %v1177_v5, %v1178_v12  ;;  %v2646_v15 = vsel %vm671_vm5, %v1197_v9, %v1198_v18  ;;  %v2649_v16 = vsel %vm285_vm4, %v1178_v12, %v1180_v8  ;;  %v2652_v58 = vsel %vm671_vm5, %v1198_v18, %v1200_v10 }
 0x112   : > { %v1217_v17 = vrot.slane %v1211_v13, 2 }
 0x114   : > { %829 = vrot.lane.b32.xlu1 %v2583_v37, %s2272_s22  ;;  %960 = vrot.lane.b32.xlu0 %v2270_v43, %s2273_s28  ;;  %v2659_v19 = vsel %vm243_vm2, %v1217_v17, %v1218_v35  ;;  %s2287_s22 = smov 124  }
 0x118   : > { %962 = vrot.lane.b32.xlu1 %v2580_v32, %s2273_s28  ;;  %964 = vrot.lane.b32.xlu0 %v2577_v42, %s2273_s28 }
 0x11c   : > { %966 = vrot.lane.b32.xlu1 %v2583_v37, %s2273_s28  ;;  %1226 = vrot.lane.b32.xlu0 %v2270_v43, %s2274_s3  ;;  %s2288_s28 = smov 123  }
 0x120   : > { %1228 = vrot.lane.b32.xlu1 %v2580_v32, %s2274_s3  ;;  %1230 = vrot.lane.b32.xlu0 %v2577_v42, %s2274_s3 }
 0x124   : > { %1232 = vrot.lane.b32.xlu1 %v2583_v37, %s2274_s3  ;;  %1363 = vrot.lane.b32.xlu0 %v2270_v43, %s2275_s6  ;;  %s2289_s3 = smov 122  }
 0x128   : > { %1365 = vrot.lane.b32.xlu1 %v2580_v32, %s2275_s6  ;;  %1367 = vrot.lane.b32.xlu0 %v2577_v42, %s2275_s6 }
 0x12c   : > { %1369 = vrot.lane.b32.xlu1 %v2583_v37, %s2275_s6  ;;  %1500 = vrot.lane.b32.xlu0 %v2270_v43, %s2276_s7  ;;  %v701_v43 = vadd.f32 %v1972_v23, %v699_v0  ;;  %s2290_s6 = smov 121  }
 0x130   : > { %1502 = vrot.lane.b32.xlu1 %v2580_v32, %s2276_s7  ;;  %1504 = vrot.lane.b32.xlu0 %v2577_v42, %s2276_s7  ;;  %v2680_v42 = vmul.f32 0.0, %v2574_v36 }
 0x134   : > { %1506 = vrot.lane.b32.xlu1 %v2583_v37, %s2276_s7  ;;  %s176_s7 = scalar_lea.vmem [#allocation7], %s1943_s29  ;;  %s1839_s29 = scalar_lea.sflag [#allocation4], %s2453_s19 }
 0x17a   : > { %v689_v30 = vpop.permute.xlu1 %688  ;;  %v691_v34 = vpop.permute.xlu0 %690 }
 0x17b   : > { %v700_v37 = vmul.f32 %v1973_v28, %v689_v30  ;;  %v709_v38 = vmul.f32 %v1974_v39, %v689_v30  ;;  %v729_v45 = vmul.f32 %v1975_v22, %v689_v30  ;;  %v710_v46 = vmul.f32 %v1974_v39, %v691_v34 }
 0x17c   : > { %v730_v48 = vmul.f32 %v1975_v22, %v691_v34  ;;  %v748_v49 = vmul.f32 %v1976_v25, %v689_v30  ;;  %v768_v50 = vmul.f32 %v1977_v41, %v689_v30  ;;  %v808_v57 = vmul.f32 %v1979_v24, %v691_v34 }
 0x17d   : > { %v702_v52 = vadd.f32 %v1972_v23, %v700_v37  ;;  %v715_v33 = vrot.slane %v709_v38, 3  ;;  %v735_v54 = vrot.slane %v729_v45, 6  ;;  %v717_v55 = vrot.slane %v710_v46, 3  ;;  %v1981_v46 = vld [vmem:[#allocation5 + $0x21] ss:$0 sm:$0xff] }
 0x17e   : > { %v737_v56 = vrot.slane %v730_v48, 6  ;;  %v754_v59 = vrot.slane %v748_v49, 1  ;;  %v774_v60 = vrot.slane %v768_v50, 4  ;;  %v693_v61 = vpop.permute.xlu1 %692  ;;  %v788_v63 = vmul.f32 %v1978_v51, %v689_v30  ;;  %v824_v20 = vpop.permute.xlu0 %823  ;;  %v1982_v49 = vld [vmem:[#allocation5 + $0x28] ss:$0 sm:$0xff] }
 0x17f   : > { %v716_v36 = vsel %vm264_vm3, %v714_v27, %v715_v33  ;;  %v736_v62 = vsel %vm181_vm0, %v734_v47, %v735_v54  ;;  %v718_v5 = vsel %vm264_vm3, %v715_v33, %v717_v55  ;;  %v749_v12 = vmul.f32 %v1976_v25, %v691_v34 }
 0x180   : > { %v721_v8 = vadd.f32 %v716_v36, %v701_v43  ;;  %v722_v9 = vadd.f32 %v718_v5, %v702_v52  ;;  %v738_v10 = vsel %vm181_vm0, %v735_v54, %v737_v56  ;;  %v794_v18 = vrot.slane %v788_v63, 7  ;;  %v1986_v63 = vld [vmem:[#allocation5 + $0x44] ss:$0 sm:$0xff] }
 0x181   : > { %v750_v13 = vmul.f32 %v1976_v25, %v693_v61  ;;  %v769_v17 = vmul.f32 %v1977_v41, %v691_v34  ;;  %v770_v28 = vmul.f32 %v1977_v41, %v693_v61  ;;  %v755_v21 = vrot.slane %v749_v12, 1 }
 0x182   : > { %v742_v39 = vadd.f32 %v738_v10, %v722_v9  ;;  %v789_v22 = vmul.f32 %v1978_v51, %v691_v34  ;;  %v790_v0 = vmul.f32 %v1978_v51, %v693_v61  ;;  %v809_v30 = vmul.f32 %v1979_v24, %v693_v61  ;;  %v826_v33 = vpop.permute.xlu1 %825  ;;  %v1980_v61 = vld [vmem:[#allocation5 + $0x1a] ss:$0 sm:$0xff]  ;;  %v1983_v10 = vld [vmem:[#allocation5 + $0x2f] ss:$0 sm:$0xff] }
 0x183   : > { %v757_v23 = vrot.slane %v750_v13, 1  ;;  %v775_v31 = vrot.slane %v769_v17, 4  ;;  %v777_v27 = vrot.slane %v770_v28, 4  ;;  %v817_v37 = vrot.slane %v810_v29, 2 }
 0x184   : > { %v795_v38 = vrot.slane %v789_v22, 7  ;;  %v797_v43 = vrot.slane %v790_v0, 7  ;;  %v741_v45 = vadd.f32 %v736_v62, %v721_v8  ;;  %v814_v47 = vrot.slane %v808_v57, 2  ;;  %v828_v62 = vpop.permute.xlu0 %827 }
 0x185   : > { %v756_v48 = vsel %vm222_vm1, %v754_v59, %v755_v21  ;;  %v758_v25 = vsel %vm222_vm1, %v755_v21, %v757_v23  ;;  %v815_v41 = vrot.slane %v809_v30, 2  ;;  %v778_v34 = vsel %vm285_vm4, %v775_v31, %v777_v27  ;;  %v1984_v30 = vld [vmem:[#allocation5 + $0x36] ss:$0 sm:$0xff] }
 0x186   : > { %v762_v50 = vadd.f32 %v758_v25, %v742_v39  ;;  %v761_v51 = vadd.f32 %v756_v48, %v741_v45  ;;  %v776_v52 = vsel %vm285_vm4, %v774_v60, %v775_v31  ;;  %v798_v24 = vsel %vm671_vm5, %v795_v38, %v797_v43  ;;  %v830_v48 = vpop.permute.xlu1 %829 }
 0x187   : > { %v818_v29 = vsel %vm243_vm2, %v815_v41, %v817_v37  ;;  %v796_v54 = vsel %vm671_vm5, %v794_v18, %v795_v38  ;;  %v845_v55 = vmul.f32 %v1981_v46, %v824_v20  ;;  %v816_v59 = vsel %vm243_vm2, %v814_v47, %v815_v41  ;;  %v1985_v37 = vld [vmem:[#allocation5 + $0x3d] ss:$0 sm:$0xff] }
 0x188   : > { %v782_v56 = vadd.f32 %v778_v34, %v762_v50  ;;  %v781_v57 = vadd.f32 %v776_v52, %v761_v51  ;;  %v865_v36 = vmul.f32 %v1982_v49, %v824_v20  ;;  %v836_v5 = vmul.f32 %v1980_v61, %v824_v20 }
 0x189   : > { %v851_v8 = vrot.slane %v845_v55, 3  ;;  %v846_v9 = vmul.f32 %v1981_v46, %v826_v33  ;;  %v866_v60 = vmul.f32 %v1982_v49, %v826_v33  ;;  %v2694_v28 = vmul.f32 %v1986_v63, %v824_v20 }
 0x18a   : > { %v802_v12 = vadd.f32 %v798_v24, %v782_v56  ;;  %v801_v13 = vadd.f32 %v796_v54, %v781_v57  ;;  %v871_v17 = vrot.slane %v865_v36, 6  ;;  %v847_v21 = vmul.f32 %v1981_v46, %v828_v62 }
 0x18b   : > { %v852_v18 = vrot.slane %v846_v9, 3  ;;  %v872_v39 = vrot.slane %v866_v60, 6  ;;  %v867_v22 = vmul.f32 %v1982_v49, %v828_v62  ;;  %v837_v31 = vmul.f32 %v1980_v61, %v826_v33  ;;  %v961_v9 = vpop.permute.xlu0 %960 }
 0x18c   : > { %v822_v0 = vadd.f32 %v818_v29, %v802_v12  ;;  %v821_v23 = vadd.f32 %v816_v59, %v801_v13  ;;  %v885_v27 = vmul.f32 %v1983_v10, %v826_v33  ;;  %v854_v43 = vrot.slane %v847_v21, 3 }
 0x18d   : > { %v853_v38 = vsel %vm264_vm3, %v851_v8, %v852_v18  ;;  %v874_v45 = vrot.slane %v867_v22, 6  ;;  %v945_v47 = vmul.f32 %v1986_v63, %v828_v62  ;;  %v873_v20 = vsel %vm181_vm0, %v871_v17, %v872_v39 }
 0x18e   : > { %v838_v25 = vadd.f32 %v836_v5, %v821_v23  ;;  %v839_v41 = vadd.f32 %v837_v31, %v822_v0  ;;  %v891_v50 = vrot.slane %v885_v27, 1  ;;  %v905_v34 = vmul.f32 %v1984_v30, %v826_v33  ;;  %v1988_v31 = vld [vmem:[#allocation5 + $0x22] ss:$0 sm:$0xff]  ;;  %v1989_v27 = vld [vmem:[#allocation5 + $0x29] ss:$0 sm:$0xff] }
 0x18f   : > { %v925_v46 = vmul.f32 %v1985_v37, %v826_v33  ;;  %v855_v49 = vsel %vm264_vm3, %v852_v18, %v854_v43  ;;  %v875_v51 = vsel %vm181_vm0, %v872_v39, %v874_v45  ;;  %v886_v29 = vmul.f32 %v1983_v10, %v828_v62  ;;  %v963_v43 = vpop.permute.xlu1 %962 }
 0x190   : > { %v858_v52 = vadd.f32 %v853_v38, %v838_v25  ;;  %v859_v24 = vadd.f32 %v855_v49, %v839_v41  ;;  %v887_v54 = vmul.f32 %v1983_v10, %v830_v48  ;;  %v911_v55 = vrot.slane %v905_v34, 4 }
 0x191   : > { %v931_v56 = vrot.slane %v925_v46, 7  ;;  %v906_v57 = vmul.f32 %v1984_v30, %v828_v62  ;;  %v907_v59 = vmul.f32 %v1984_v30, %v830_v48  ;;  %v892_v36 = vrot.slane %v886_v29, 1  ;;  %v965_v46 = vpop.permute.xlu0 %964 }
 0x192   : > { %v879_v61 = vadd.f32 %v875_v51, %v859_v24  ;;  %v894_v5 = vrot.slane %v887_v54, 1  ;;  %v926_v8 = vmul.f32 %v1985_v37, %v828_v62  ;;  %v927_v33 = vmul.f32 %v1985_v37, %v830_v48  ;;  %v1990_v24 = vld [vmem:[#allocation5 + $0x30] ss:$0 sm:$0xff]  ;;  %v1993_v54 = vld [vmem:[#allocation5 + $0x45] ss:$0 sm:$0xff] }
 0x193   : > { %v912_v60 = vrot.slane %v906_v57, 4  ;;  %v914_v12 = vrot.slane %v907_v59, 4  ;;  %v946_v13 = vmul.f32 %v1986_v63, %v830_v48  ;;  %v954_v17 = vrot.slane %v2694_v28, 2  ;;  %v1987_v63 = vld [vmem:[#allocation5 + $0x1b] ss:$0 sm:$0xff] }
 0x194   : > { %v895_v18 = vsel %vm222_vm1, %v892_v36, %v894_v5  ;;  %v932_v39 = vrot.slane %v926_v8, 7  ;;  %v878_v21 = vadd.f32 %v873_v20, %v858_v52  ;;  %v893_v10 = vsel %vm222_vm1, %v891_v50, %v892_v36 }
 0x195   : > { %v899_v22 = vadd.f32 %v895_v18, %v879_v61  ;;  %v934_v0 = vrot.slane %v927_v33, 7  ;;  %v952_v23 = vrot.slane %v946_v13, 2  ;;  %v951_v30 = vrot.slane %v945_v47, 2  ;;  %v1991_v13 = vld [vmem:[#allocation5 + $0x37] ss:$0 sm:$0xff] }
 0x196   : > { %v915_v62 = vsel %vm285_vm4, %v912_v60, %v914_v12  ;;  %v898_v38 = vadd.f32 %v893_v10, %v878_v21  ;;  %v913_v37 = vsel %vm285_vm4, %v911_v55, %v912_v60  ;;  %v933_v48 = vsel %vm671_vm5, %v931_v56, %v932_v39 }
 0x197   : > { %v919_v28 = vadd.f32 %v915_v62, %v899_v22  ;;  %v935_v45 = vsel %vm671_vm5, %v932_v39, %v934_v0  ;;  %v973_v25 = vmul.f32 %v1987_v63, %v961_v9  ;;  %v955_v41 = vsel %vm243_vm2, %v952_v23, %v954_v17  ;;  %v1992_v17 = vld [vmem:[#allocation5 + $0x3e] ss:$0 sm:$0xff]  ;;  %v967_v22 = vpop.permute.xlu1 %966 }
 0x198   : > { %v918_v20 = vadd.f32 %v913_v37, %v898_v38  ;;  %v982_v50 = vmul.f32 %v1988_v31, %v961_v9  ;;  %v1002_v34 = vmul.f32 %v1989_v27, %v961_v9  ;;  %v953_v49 = vsel %vm243_vm2, %v951_v30, %v952_v23 }
 0x199   : > { %v939_v47 = vadd.f32 %v935_v45, %v919_v28  ;;  %v983_v51 = vmul.f32 %v1988_v31, %v963_v43  ;;  %v1003_v52 = vmul.f32 %v1989_v27, %v963_v43  ;;  %v974_v59 = vmul.f32 %v1987_v63, %v963_v43 }
 0x19a   : > { %v938_v29 = vadd.f32 %v933_v48, %v918_v20  ;;  %v988_v55 = vrot.slane %v982_v50, 3  ;;  %v1008_v57 = vrot.slane %v1002_v34, 6  ;;  %v984_v5 = vmul.f32 %v1988_v31, %v965_v46 }
 0x19b   : > { %v959_v61 = vadd.f32 %v955_v41, %v939_v47  ;;  %v989_v56 = vrot.slane %v983_v51, 3  ;;  %v1009_v36 = vrot.slane %v1003_v52, 6  ;;  %v2709_v60 = vmul.f32 %v1993_v54, %v961_v9 }
 0x19c   : > { %v958_v8 = vadd.f32 %v953_v49, %v938_v29  ;;  %v1004_v12 = vmul.f32 %v1989_v27, %v965_v46  ;;  %v1022_v33 = vmul.f32 %v1990_v24, %v963_v43  ;;  %v991_v21 = vrot.slane %v984_v5, 3 }
 0x19d   : > { %v976_v18 = vadd.f32 %v974_v59, %v959_v61  ;;  %v990_v39 = vsel %vm264_vm3, %v988_v55, %v989_v56  ;;  %v1082_v10 = vmul.f32 %v1993_v54, %v965_v46  ;;  %v1010_v23 = vsel %vm181_vm0, %v1008_v57, %v1009_v36 }
 0x19e   : > { %v975_v0 = vadd.f32 %v973_v25, %v958_v8  ;;  %v1011_v30 = vrot.slane %v1004_v12, 6  ;;  %v1028_v62 = vrot.slane %v1022_v33, 1  ;;  %v1042_v38 = vmul.f32 %v1991_v13, %v963_v43  ;;  %v1227_v8 = vpop.permute.xlu0 %1226 }
 0x19f   : > { %v1062_v31 = vmul.f32 %v1992_v17, %v963_v43  ;;  %v992_v9 = vsel %vm264_vm3, %v989_v56, %v991_v21  ;;  %v1023_v37 = vmul.f32 %v1990_v24, %v965_v46  ;;  %v1024_v45 = vmul.f32 %v1990_v24, %v967_v22 }
 0x1a0   : > { %v995_v27 = vadd.f32 %v990_v39, %v975_v0  ;;  %v996_v63 = vadd.f32 %v992_v9, %v976_v18  ;;  %v1012_v28 = vsel %vm181_vm0, %v1009_v36, %v1011_v30  ;;  %v1048_v48 = vrot.slane %v1042_v38, 4  ;;  %v1229_v30 = vpop.permute.xlu1 %1228  ;;  %v2003_v9 = vld [vmem:[#allocation5 + $0x2b] ss:$0 sm:$0xff] }
 0x1a1   : > { %v1068_v41 = vrot.slane %v1062_v31, 7  ;;  %v1029_v20 = vrot.slane %v1023_v37, 1  ;;  %v1043_v50 = vmul.f32 %v1991_v13, %v965_v46  ;;  %v1031_v47 = vrot.slane %v1024_v45, 1 }
 0x1a2   : > { %v1015_v34 = vadd.f32 %v1010_v23, %v995_v27  ;;  %v1016_v25 = vadd.f32 %v1012_v28, %v996_v63  ;;  %v1044_v49 = vmul.f32 %v1991_v13, %v967_v22  ;;  %v1063_v43 = vmul.f32 %v1992_v17, %v965_v46  ;;  %v1994_v46 = vld [vmem:[#allocation5 + $0x1c] ss:$0 sm:$0xff]  ;;  %v2002_v23 = vld [vmem:[#allocation5 + $0x24] ss:$0 sm:$0xff] }
 0x1a3   : > { %v1030_v51 = vsel %vm222_vm1, %v1028_v62, %v1029_v20  ;;  %v1049_v52 = vrot.slane %v1043_v50, 4  ;;  %v1064_v29 = vmul.f32 %v1992_v17, %v967_v22  ;;  %v1032_v55 = vsel %vm222_vm1, %v1029_v20, %v1031_v47  ;;  %v2007_v47 = vld [vmem:[#allocation5 + $0x47] ss:$0 sm:$0xff] }
 0x1a4   : > { %v1035_v57 = vadd.f32 %v1030_v51, %v1015_v34  ;;  %v1051_v59 = vrot.slane %v1044_v49, 4  ;;  %v1083_v61 = vmul.f32 %v1993_v54, %v967_v22  ;;  %v1036_v56 = vadd.f32 %v1032_v55, %v1016_v25 }
 0x1a5   : > { %v1050_v24 = vsel %vm285_vm4, %v1048_v48, %v1049_v52  ;;  %v1069_v36 = vrot.slane %v1063_v43, 7  ;;  %v1071_v5 = vrot.slane %v1064_v29, 7  ;;  %v1091_v12 = vrot.slane %v2709_v60, 2 }
 0x1a6   : > { %v1052_v33 = vsel %vm285_vm4, %v1049_v52, %v1051_v59  ;;  %v1055_v13 = vadd.f32 %v1050_v24, %v1035_v57  ;;  %v1089_v18 = vrot.slane %v1083_v61, 2  ;;  %v1088_v39 = vrot.slane %v1082_v10, 2  ;;  %v2004_v61 = vld [vmem:[#allocation5 + $0x32] ss:$0 sm:$0xff] }
 0x1a7   : > { %v1056_v17 = vadd.f32 %v1052_v33, %v1036_v56  ;;  %v1070_v21 = vsel %vm671_vm5, %v1068_v41, %v1069_v36  ;;  %v1102_v0 = vmul.f32 0.0, %v1994_v46  ;;  %v1072_v54 = vsel %vm671_vm5, %v1069_v36, %v1071_v5  ;;  %v1231_v41 = vpop.permute.xlu0 %1230  ;;  %v1233_v36 = vpop.permute.xlu1 %1232 }
 0x1a8   : > { %v1075_v22 = vadd.f32 %v1070_v21, %v1055_v13  ;;  %v1117_v62 = vrot.slane %v2677_v26, 3  ;;  %v1090_v60 = vsel %vm243_vm2, %v1088_v39, %v1089_v18  ;;  %v1213_v31 = vmul.f32 0.0, %v2606_v53  ;;  %v2005_v13 = vld [vmem:[#allocation5 + $0x39] ss:$0 sm:$0xff] }
 0x1a9   : > { %v1076_v38 = vadd.f32 %v1072_v54, %v1056_v17  ;;  %v1092_v10 = vsel %vm243_vm2, %v1089_v18, %v1091_v12  ;;  %v1137_v27 = vrot.slane %v2680_v42, 6  ;;  %v1103_v63 = vmul.f32 %v1994_v46, %v2580_v32  ;;  %v2001_v42 = vld [vmem:[#allocation5 + $0x1d] ss:$0 sm:$0xff]  ;;  %v2006_v46 = vld [vmem:[#allocation5 + $0x40] ss:$0 sm:$0xff] }
 0x1aa   : > { %v1095_v37 = vadd.f32 %v1090_v60, %v1075_v22  ;;  %v1248_v45 = vmul.f32 %v2002_v23, %v1227_v8  ;;  %v1249_v48 = vmul.f32 %v2002_v23, %v1229_v30  ;;  %v1268_v50 = vmul.f32 %v2003_v9, %v1227_v8 }
 0x1ab   : > { %v1096_v28 = vadd.f32 %v1092_v10, %v1076_v38  ;;  %v2728_v26 = vmul.f32 %v2003_v9, %v1229_v30  ;;  %v1119_v53 = vsel %vm264_vm3, %v1117_v62, %v1118_v4  ;;  %v1220_v25 = vrot.slane %v1213_v31, 2 }
 0x1ac   : > { %v1104_v20 = vadd.f32 %v1102_v0, %v1095_v37  ;;  %v1139_v32 = vsel %vm181_vm0, %v1137_v27, %v1138_v6  ;;  %v2736_v51 = vmul.f32 %v2007_v47, %v1227_v8  ;;  %v1250_v52 = vmul.f32 %v2002_v23, %v1231_v41 }
 0x1ad   : > { %v1105_v34 = vadd.f32 %v1103_v63, %v1096_v28  ;;  %v1254_v29 = vrot.slane %v1248_v45, 3  ;;  %v1255_v55 = vrot.slane %v1249_v48, 3  ;;  %v1270_v57 = vmul.f32 %v2003_v9, %v1231_v41  ;;  %v2009_v63 = vld [vmem:[#allocation5 + $0x25] ss:$0 sm:$0xff]  ;;  %v1364_v28 = vpop.permute.xlu0 %1363  ;;  %v2758_v45 = vpop.permute.xlu1 %1365 }
 0x1ae   : > { %v1124_v49 = vadd.f32 %v1119_v53, %v1104_v20  ;;  %v1274_v59 = vrot.slane %v1268_v50, 6  ;;  %v1275_v4 = vrot.slane %v2728_v26, 6  ;;  %v1239_v24 = vmul.f32 %v2001_v42, %v1227_v8  ;;  %v2010_v53 = vld [vmem:[#allocation5 + $0x2c] ss:$0 sm:$0xff] }
 0x1af   : > { %v1125_v43 = vadd.f32 %v2624_v2, %v1105_v34  ;;  %v1221_v44 = vsel %vm243_vm2, %v1218_v35, %v1220_v25  ;;  %v1240_v6 = vmul.f32 %v2001_v42, %v1229_v30  ;;  %v1357_v2 = vrot.slane %v2736_v51, 2 }
 0x1b0   : > { %v1144_v40 = vadd.f32 %v1139_v32, %v1124_v49  ;;  %v1257_v12 = vrot.slane %v1250_v52, 3  ;;  %v2746_v33 = vmul.f32 %v2007_v47, %v1231_v41  ;;  %v1256_v39 = vsel %vm264_vm3, %v1254_v29, %v1255_v55 }
 0x1b1   : > { %v1145_v56 = vadd.f32 %v2629_v3, %v1125_v43  ;;  %v1277_v3 = vrot.slane %v1270_v57, 6  ;;  %v1288_v8 = vmul.f32 %v2004_v61, %v1229_v30  ;;  %v1276_v35 = vsel %vm181_vm0, %v1274_v59, %v1275_v4  ;;  %v2008_v57 = vld [vmem:[#allocation5 + $0x1e] ss:$0 sm:$0xff] }
 0x1b2   : > { %v1164_v5 = vadd.f32 %v2637_v11, %v1144_v40  ;;  %v1289_v17 = vmul.f32 %v2004_v61, %v1231_v41  ;;  %v1290_v21 = vmul.f32 %v2004_v61, %v1233_v36  ;;  %v1308_v0 = vmul.f32 %v2005_v13, %v1229_v30  ;;  %v2014_v40 = vld [vmem:[#allocation5 + $0x48] ss:$0 sm:$0xff] }
 0x1b3   : > { %v1165_v18 = vadd.f32 %v2632_v7, %v1145_v56  ;;  %v1309_v54 = vmul.f32 %v2005_v13, %v1231_v41  ;;  %v1310_v22 = vmul.f32 %v2005_v13, %v1233_v36  ;;  %v1328_v62 = vmul.f32 %v2006_v46, %v1229_v30 }
 0x1b4   : > { %v1184_v1 = vadd.f32 %v2643_v14, %v1164_v5  ;;  %v1329_v7 = vmul.f32 %v2006_v46, %v1231_v41  ;;  %v1330_v38 = vmul.f32 %v2006_v46, %v1233_v36  ;;  %v1354_v31 = vrot.slane %v2746_v33, 2  ;;  %v2011_v33 = vld [vmem:[#allocation5 + $0x33] ss:$0 sm:$0xff] }
 0x1b5   : > { %v1185_v11 = vadd.f32 %v2649_v16, %v1165_v18  ;;  %v1294_v9 = vrot.slane %v1288_v8, 1  ;;  %v1258_v14 = vsel %vm264_vm3, %v1255_v55, %v1257_v12  ;;  %v1295_v37 = vrot.slane %v1289_v17, 1  ;;  %v1370_v17 = vpop.permute.xlu1 %1369 }
 0x1b6   : > { %v1204_v23 = vadd.f32 %v2646_v15, %v1184_v1  ;;  %v1297_v27 = vrot.slane %v1290_v21, 1  ;;  %v1349_v16 = vmul.f32 %v2007_v47, %v1233_v36  ;;  %v1314_v30 = vrot.slane %v1308_v0, 4 }
 0x1b7   : > { %v1205_v60 = vadd.f32 %v2652_v58, %v1185_v11  ;;  %v1315_v48 = vrot.slane %v1309_v54, 4  ;;  %v1317_v41 = vrot.slane %v1310_v22, 4  ;;  %v1334_v58 = vrot.slane %v1328_v62, 7  ;;  %v2012_v22 = vld [vmem:[#allocation5 + $0x3a] ss:$0 sm:$0xff] }
 0x1b8   : > { %v1224_v10 = vadd.f32 %v2659_v19, %v1204_v23  ;;  %v1335_v50 = vrot.slane %v1329_v7, 7  ;;  %v1337_v26 = vrot.slane %v1330_v38, 7  ;;  %v1278_v25 = vsel %vm181_vm0, %v1275_v4, %v1277_v3  ;;  %v2013_v38 = vld [vmem:[#allocation5 + $0x41] ss:$0 sm:$0xff] }
 0x1b9   : > { %v1225_v15 = vadd.f32 %v1221_v44, %v1205_v60  ;;  %v1385_v19 = vmul.f32 %v2009_v63, %v1364_v28  ;;  %v2762_v49 = vmul.f32 %v2009_v63, %v2758_v45  ;;  %v1296_v32 = vsel %vm222_vm1, %v1294_v9, %v1295_v37  ;;  %v1368_v44 = vpop.permute.xlu0 %1367 }
 0x1ba   : > { %v1241_v20 = vadd.f32 %v1239_v24, %v1224_v10  ;;  %v1298_v42 = vsel %vm222_vm1, %v1295_v37, %v1297_v27  ;;  %v1355_v52 = vrot.slane %v1349_v16, 2  ;;  %v1318_v29 = vsel %vm285_vm4, %v1315_v48, %v1317_v41 }
 0x1bb   : > { %v1242_v34 = vadd.f32 %v1240_v6, %v1225_v15  ;;  %v1316_v55 = vsel %vm285_vm4, %v1314_v30, %v1315_v48  ;;  %v1405_v59 = vmul.f32 %v2010_v53, %v1364_v28  ;;  %v1338_v4 = vsel %vm671_vm5, %v1335_v50, %v1337_v26 }
 0x1bc   : > { %v1261_v47 = vadd.f32 %v1256_v39, %v1241_v20  ;;  %v1336_v61 = vsel %vm671_vm5, %v1334_v58, %v1335_v50  ;;  %v2770_v24 = vmul.f32 %v2014_v40, %v1364_v28  ;;  %v1391_v36 = vrot.slane %v1385_v19, 3 }
 0x1bd   : > { %v1262_v43 = vadd.f32 %v1258_v14, %v1242_v34  ;;  %v1392_v5 = vrot.slane %v2762_v49, 3  ;;  %v1406_v12 = vmul.f32 %v2010_v53, %v2758_v45  ;;  %v1358_v13 = vsel %vm243_vm2, %v1355_v52, %v1357_v2  ;;  %v1501_v58 = vpop.permute.xlu0 %1500 }
 0x1be   : > { %v1281_v56 = vadd.f32 %v1276_v35, %v1261_v47  ;;  %v1376_v39 = vmul.f32 %v2008_v57, %v1364_v28  ;;  %v1377_v3 = vmul.f32 %v2008_v57, %v2758_v45  ;;  %v1356_v46 = vsel %vm243_vm2, %v1354_v31, %v1355_v52 }
 0x1bf   : > { %v1282_v6 = vadd.f32 %v1278_v25, %v1262_v43  ;;  %v1411_v1 = vrot.slane %v1405_v59, 6  ;;  %v1387_v35 = vmul.f32 %v2009_v63, %v1368_v44  ;;  %v1407_v11 = vmul.f32 %v2010_v53, %v1368_v44 }
 0x1c0   : > { %v1301_v18 = vadd.f32 %v1296_v32, %v1281_v56  ;;  %v2779_v0 = vmul.f32 %v2014_v40, %v1368_v44  ;;  %v1425_v54 = vmul.f32 %v2011_v33, %v2758_v45  ;;  %v1494_v2 = vrot.slane %v2770_v24, 2 }
 0x1c1   : > { %v1302_v8 = vadd.f32 %v1298_v42, %v1282_v6  ;;  %v1393_v23 = vsel %vm264_vm3, %v1391_v36, %v1392_v5  ;;  %v1412_v62 = vrot.slane %v1406_v12, 6  ;;  %v1426_v60 = vmul.f32 %v2011_v33, %v1368_v44 }
 0x1c2   : > { %v1321_v21 = vadd.f32 %v1316_v55, %v1301_v18  ;;  %v1427_v31 = vmul.f32 %v2011_v33, %v1370_v17  ;;  %v1447_v9 = vmul.f32 %v2012_v22, %v1370_v17  ;;  %v1394_v10 = vrot.slane %v1387_v35, 3  ;;  %v2015_v18 = vld [vmem:[#allocation5 + $0x1f] ss:$0 sm:$0xff] }
 0x1c3   : > { %v1322_v51 = vadd.f32 %v1318_v29, %v1302_v8  ;;  %v1445_v37 = vmul.f32 %v2012_v22, %v2758_v45  ;;  %v1446_v27 = vmul.f32 %v2012_v22, %v1368_v44  ;;  %v1414_v63 = vrot.slane %v1407_v11, 6  ;;  %v2016_v29 = vld [vmem:[#allocation5 + $0x26] ss:$0 sm:$0xff]  ;;  %v2021_v11 = vld [vmem:[#allocation5 + $0x49] ss:$0 sm:$0xff] }
 0x1c4   : > { %v1341_v7 = vadd.f32 %v1336_v61, %v1321_v21  ;;  %v1491_v28 = vrot.slane %v2779_v0, 2  ;;  %v1431_v15 = vrot.slane %v1425_v54, 1  ;;  %v1465_v48 = vmul.f32 %v2013_v38, %v2758_v45  ;;  %v1503_v61 = vpop.permute.xlu1 %1502 }
 0x1c5   : > { %v1342_v14 = vadd.f32 %v1338_v4, %v1322_v51  ;;  %v1466_v41 = vmul.f32 %v2013_v38, %v1368_v44  ;;  %v1467_v20 = vmul.f32 %v2013_v38, %v1370_v17  ;;  %v1432_v26 = vrot.slane %v1426_v60, 1  ;;  %v2017_v4 = vld [vmem:[#allocation5 + $0x2d] ss:$0 sm:$0xff] }
 0x1c6   : > { %v1361_v16 = vadd.f32 %v1356_v46, %v1341_v7  ;;  %v1434_v53 = vrot.slane %v1427_v31, 1  ;;  %v1454_v34 = vrot.slane %v1447_v9, 4  ;;  %v1451_v19 = vrot.slane %v1445_v37, 4 }
 0x1c7   : > { %v1362_v30 = vadd.f32 %v1358_v13, %v1342_v14  ;;  %v1452_v49 = vrot.slane %v1446_v27, 4  ;;  %v1486_v47 = vmul.f32 %v2014_v40, %v1370_v17  ;;  %v1413_v42 = vsel %vm181_vm0, %v1411_v1, %v1412_v62  ;;  %v1505_v13 = vpop.permute.xlu0 %1504  ;;  %v2018_v1 = vld [vmem:[#allocation5 + $0x34] ss:$0 sm:$0xff]  ;;  %v2019_v27 = vld [vmem:[#allocation5 + $0x3b] ss:$0 sm:$0xff] }
 0x1c8   : > { %v1378_v50 = vadd.f32 %v1376_v39, %v1361_v16  ;;  %v1395_v52 = vsel %vm264_vm3, %v1392_v5, %v1394_v10  ;;  %v1415_v43 = vsel %vm181_vm0, %v1412_v62, %v1414_v63  ;;  %v1471_v45 = vrot.slane %v1465_v48, 7  ;;  %v1507_v31 = vpop.permute.xlu1 %1506 }
 0x1c9   : > { %v1379_v25 = vadd.f32 %v1377_v3, %v1362_v30  ;;  %v1472_v57 = vrot.slane %v1466_v41, 7  ;;  %v1474_v59 = vrot.slane %v1467_v20, 7  ;;  %v1433_v56 = vsel %vm222_vm1, %v1431_v15, %v1432_v26 }
 0x1ca   : > { %v1398_v32 = vadd.f32 %v1393_v23, %v1378_v50  ;;  %v1435_v44 = vsel %vm222_vm1, %v1432_v26, %v1434_v53  ;;  %v1455_v40 = vsel %vm285_vm4, %v1452_v49, %v1454_v34  ;;  %v1492_v12 = vrot.slane %v1486_v47, 2 }
 0x1cb   : > { %v1399_v55 = vadd.f32 %v1395_v52, %v1379_v25  ;;  %v1453_v5 = vsel %vm285_vm4, %v1451_v19, %v1452_v49  ;;  %v1522_v33 = vmul.f32 %v2016_v29, %v1501_v58  ;;  %v1542_v3 = vmul.f32 %v2017_v4, %v1501_v58 }
 0x1cc   : > { %v1418_v6 = vadd.f32 %v1413_v42, %v1398_v32  ;;  %v1523_v8 = vmul.f32 %v2016_v29, %v1503_v61  ;;  %v1543_v46 = vmul.f32 %v2017_v4, %v1503_v61  ;;  %v1475_v17 = vsel %vm671_vm5, %v1472_v57, %v1474_v59 }
 0x1cd   : > { %v1419_v36 = vadd.f32 %v1415_v43, %v1399_v55  ;;  %v1473_v21 = vsel %vm671_vm5, %v1471_v45, %v1472_v57  ;;  %v1513_v0 = vmul.f32 %v2015_v18, %v1501_v58  ;;  %v2796_v22 = vmul.f32 %v2021_v11, %v1501_v58  ;;  %v2020_v58 = vld [vmem:[#allocation5 + $0x42] ss:$0 sm:$0xff] }
 0x1ce   : > { %v1438_v39 = vadd.f32 %v1433_v56, %v1418_v6  ;;  %v1524_v51 = vmul.f32 %v2016_v29, %v1505_v13  ;;  %v1544_v23 = vmul.f32 %v2017_v4, %v1505_v13  ;;  %v1495_v7 = vsel %vm243_vm2, %v1492_v12, %v1494_v2 }
 0x1cf   : > { %v1439_v35 = vadd.f32 %v1435_v44, %v1419_v36  ;;  %v1528_v38 = vrot.slane %v1522_v33, 3  ;;  %v1562_v60 = vmul.f32 %v2018_v1, %v1503_v61  ;;  %v1548_v14 = vrot.slane %v1542_v3, 6 }
 0x1d0   : > { %v1458_v54 = vadd.f32 %v1453_v5, %v1438_v39  ;;  %v1529_v10 = vrot.slane %v1523_v8, 3  ;;  %v1549_v37 = vrot.slane %v1543_v46, 6  ;;  %v1493_v63 = vsel %vm243_vm2, %v1491_v28, %v1492_v12 }
 0x1d1   : > { %v1459_v62 = vadd.f32 %v1455_v40, %v1439_v35  ;;  %v1514_v15 = vmul.f32 %v2015_v18, %v1503_v61  ;;  %v1563_v30 = vmul.f32 %v2018_v1, %v1505_v13  ;;  %v1531_v41 = vrot.slane %v1524_v51, 3 }
 0x1d2   : > { %v1478_v9 = vadd.f32 %v1473_v21, %v1458_v54  ;;  %v1551_v20 = vrot.slane %v1544_v23, 6  ;;  %v1564_v24 = vmul.f32 %v2018_v1, %v1507_v31  ;;  %v1568_v2 = vrot.slane %v1562_v60, 1 }
 0x1d3   : > { %v1479_v16 = vadd.f32 %v1475_v17, %v1459_v62  ;;  %v1582_v26 = vmul.f32 %v2019_v27, %v1503_v61  ;;  %v1583_v53 = vmul.f32 %v2019_v27, %v1505_v13  ;;  %v1530_v25 = vsel %vm264_vm3, %v1528_v38, %v1529_v10 }
 0x1d4   : > { %v1498_v48 = vadd.f32 %v1493_v63, %v1478_v9  ;;  %v1550_v19 = vsel %vm181_vm0, %v1548_v14, %v1549_v37  ;;  %v1584_v49 = vmul.f32 %v2019_v27, %v1507_v31  ;;  %v1602_v32 = vmul.f32 %v2020_v58, %v1503_v61 }
 0x1d5   : > { %v1499_v50 = vadd.f32 %v1495_v7, %v1479_v16  ;;  %v1569_v28 = vrot.slane %v1563_v30, 1  ;;  %v1603_v42 = vmul.f32 %v2020_v58, %v1505_v13  ;;  %v1532_v43 = vsel %vm264_vm3, %v1529_v10, %v1531_v41  ;;  %v2023_v16 = vld [vmem:[#allocation5 + $0x4a] ss:$0 sm:$0xff]  ;;  %v2024_v30 = vld [vmem:[#allocation5 + $0x4b] ss:$0 sm:$0xff] }
 0x1d6   : > { %v1515_v34 = vadd.f32 %v1513_v0, %v1498_v48  ;;  %v1571_v29 = vrot.slane %v1564_v24, 1  ;;  %v1604_v45 = vmul.f32 %v2020_v58, %v1507_v31  ;;  %v1588_v55 = vrot.slane %v1582_v26, 4  ;;  %v2022_v41 = vld [vmem:[#allocation5 + $0x5b] ss:$0 sm:$0xff]  ;;  %v2025_v58 = vld [vmem:[#allocation5 + $0x4c] ss:$0 sm:$0xff] }
 0x1d7   : > { %v1516_v47 = vadd.f32 %v1514_v15, %v1499_v50  ;;  %v1589_v59 = vrot.slane %v1583_v53, 4  ;;  %v1623_v4 = vmul.f32 %v2021_v11, %v1507_v31  ;;  %v1622_v44 = vmul.f32 %v2021_v11, %v1505_v13  ;;  %v2026_v53 = vld [vmem:[#allocation5 + $0x4d] ss:$0 sm:$0xff] }
 0x1d8   : > { %v1535_v52 = vadd.f32 %v1530_v25, %v1515_v34  ;;  %v1552_v40 = vsel %vm181_vm0, %v1549_v37, %v1551_v20  ;;  %v1591_v6 = vrot.slane %v1584_v49, 4  ;;  %v1608_v36 = vrot.slane %v1602_v32, 7 }
 0x1d9   : > { %v1536_v57 = vadd.f32 %v1532_v43, %v1516_v47  ;;  %v1570_v61 = vsel %vm222_vm1, %v1568_v2, %v1569_v28  ;;  %v1609_v5 = vrot.slane %v1603_v42, 7  ;;  %v1572_v33 = vsel %vm222_vm1, %v1569_v28, %v1571_v29  ;;  %v2027_v47 = vld [vmem:[#allocation5 + $0x4e] ss:$0 sm:$0xff] }
 0x1da   : > { %v1555_v56 = vadd.f32 %v1550_v19, %v1535_v52  ;;  %v1611_v39 = vrot.slane %v1604_v45, 7  ;;  %v1590_v8 = vsel %vm285_vm4, %v1588_v55, %v1589_v59  ;;  %v1629_v46 = vrot.slane %v1623_v4, 2  ;;  %v2028_v45 = vld [vmem:[#allocation5 + $0x4f] ss:$0 sm:$0xff] }
 0x1db   : > { %v1556_v12 = vadd.f32 %v1552_v40, %v1536_v57  ;;  %v1631_v1 = vrot.slane %v2796_v22, 2  ;;  %v1592_v13 = vsel %vm285_vm4, %v1589_v59, %v1591_v6  ;;  %v1628_v17 = vrot.slane %v1622_v44, 2 }
 0x1dc   : > { %v1575_v18 = vadd.f32 %v1570_v61, %v1555_v56  ;;  %v1610_v11 = vsel %vm671_vm5, %v1608_v36, %v1609_v5  ;;  %v1612_v0 = vsel %vm671_vm5, %v1609_v5, %v1611_v39  ;;  %v2029_v56 = vld [vmem:[#allocation5 + $0x50] ss:$0 sm:$0xff] }
 0x1dd   : > { %v1576_v3 = vadd.f32 %v1572_v33, %v1556_v12  ;;  %v1630_v23 = vsel %vm243_vm2, %v1628_v17, %v1629_v46  ;;  %v1632_v62 = vsel %vm243_vm2, %v1629_v46, %v1631_v1 }
 0x1de   : > { %v1595_v35 = vadd.f32 %v1590_v8, %v1575_v18 }
 0x1df   : > { %v1596_v21 = vadd.f32 %v1592_v13, %v1576_v3  ;;  %v2030_v13 = vld [vmem:[#allocation5 + $0x51] ss:$0 sm:$0xff] }
 0x1e0   : > { %v1615_v54 = vadd.f32 %v1610_v11, %v1595_v35 }
 0x1e1   : > { %v1616_v51 = vadd.f32 %v1612_v0, %v1596_v21  ;;  %v2031_v21 = vld [vmem:[#allocation5 + $0x52] ss:$0 sm:$0xff] }
 0x1e2   : > { %v2815_v7 = vadd.f32 %v1630_v23, %v1615_v54  ;;  %v2032_v23 = vld [vmem:[#allocation5 + $0x53] ss:$0 sm:$0xff] }
 0x1e3   : > { %v2817_v38 = vadd.f32 %v1632_v62, %v1616_v51 }
 0x1e4   : > { %1643 = vrot.lane.b32.xlu0 %v2815_v7, %s2277_s20  ;;  %v1739_v0 = vmul.f32 %v2030_v13, %v2815_v7 }
 0x1e5   : > { %1645 = vrot.lane.b32.xlu1 %v2817_v38, %s2277_s20  ;;  %v1740_v51 = vmul.f32 %v2030_v13, %v2817_v38  ;;  %s1852_s20 = sshll.u32 %s176_s7, 4  ;;  %s2852_s20 = int_to_ptr.vmem [resolvable:$true] %s1852_s20 }
 0x1e8   : > { %1656 = vrot.lane.b32.xlu0 %v2815_v7, %s2278_s18 }
 0x1e9   : > { %1658 = vrot.lane.b32.xlu1 %v2817_v38, %s2278_s18  ;;  %s2044_s18 = sshll.u32 %s2329_s13, 8  ;;  %s2291_s13 = smov [#allocation7]  }
 0x1ec   : > { %1669 = vrot.lane.b32.xlu0 %v2815_v7, %s2279_s24 }
 0x1ed   : > { %1671 = vrot.lane.b32.xlu1 %v2817_v38, %s2279_s24 }
 0x1f0   : > { %1682 = vrot.lane.b32.xlu0 %v2815_v7, %s2280_s25 }
 0x1f1   : > { %1684 = vrot.lane.b32.xlu1 %v2817_v38, %s2280_s25 }
 0x1f4   : > { %1695 = vrot.lane.b32.xlu0 %v2815_v7, %s2281_s26 }
 0x1f5   : > { %1697 = vrot.lane.b32.xlu1 %v2817_v38, %s2281_s26  ;;  %s2859_s26 = scalar_lea.hbm %s2906_s2, %s2044_s18 }
 0x1f8   : > { %1708 = vrot.lane.b32.xlu0 %v2815_v7, %s2282_s30 }
 0x1f9   : > { %1710 = vrot.lane.b32.xlu1 %v2817_v38, %s2282_s30  ;;  %s2190_s30 = scalar_lea.vmem %s2852_s20, 256 }
 0x1fa   : > { %p2191_p4 = scmp.ne.s32.totalorder %s2852_s20, %s2190_s30 }
 0x1fc   : > { %1721 = vrot.lane.b32.xlu0 %v2815_v7, %s2283_s15  ;;  %p2192_p6 = pnand %p2191_p4, %p2402_p12 }
 0x1fd   : > { %1723 = vrot.lane.b32.xlu1 %v2817_v38, %s2283_s15  ;;  %s2194_s15 = sshll.u32 %s2291_s13, 4  ;;  %s2195_s15 = int_to_ptr.vmem [resolvable:$false] %s2194_s15 }
 0x1fe   : > { %p2193_p8 = pneg %p2192_p6  ;;  %p2197_p10 = scmp.lt.s32.totalorder %s2852_s20, %s2195_s15 }
 0x200   : > { %1743 = vrot.lane.b32.xlu0 %v2815_v7, %s2284_s4 }
 0x201   : > { %1745 = vrot.lane.b32.xlu1 %v2817_v38, %s2284_s4  ;;  %s2196_s4 = scalar_lea.vmem %s2195_s15, 512 }
 0x202   : > { %p2198_p13 = scmp.lt.s32.totalorder %s2196_s4, %s2190_s30 }
 0x204   : > { %1756 = vrot.lane.b32.xlu0 %v2815_v7, %s2285_s5  ;;  %p2199_p3 = por %p2198_p13, %p2197_p10 }
 0x205   : > { %1758 = vrot.lane.b32.xlu1 %v2817_v38, %s2285_s5 }
 0x206   : > { %p2200_p7 = pnand %p2199_p3, %p2193_p8 }
 0x208   : > { %1769 = vrot.lane.b32.xlu0 %v2815_v7, %s2286_s27 }
 0x209   : > { %1771 = vrot.lane.b32.xlu1 %v2817_v38, %s2286_s27 }
 0x20c   : > { %1782 = vrot.lane.b32.xlu0 %v2815_v7, %s2287_s22 }
 0x20d   : > { %1784 = vrot.lane.b32.xlu1 %v2817_v38, %s2287_s22 }
 0x210   : > { %1795 = vrot.lane.b32.xlu0 %v2815_v7, %s2288_s28 }
 0x211   : > { %1797 = vrot.lane.b32.xlu1 %v2817_v38, %s2288_s28 }
 0x214   : > { %1808 = vrot.lane.b32.xlu0 %v2815_v7, %s2289_s3 }
 0x215   : > { %1810 = vrot.lane.b32.xlu1 %v2817_v38, %s2289_s3 }
 0x218   : > { %1821 = vrot.lane.b32.xlu0 %v2815_v7, %s2290_s6 }
 0x219   : > { %1823 = vrot.lane.b32.xlu1 %v2817_v38, %s2290_s6 }
 0x256   : > { %v1644_v22 = vpop.permute.xlu0 %1643 }
 0x257   : > { %v1646_v60 = vpop.permute.xlu1 %1645  ;;  %v1652_v48 = vmul.f32 %v2023_v16, %v1644_v22 }
 0x258   : > { %v1653_v20 = vmul.f32 %v2023_v16, %v1646_v60  ;;  %v2034_v16 = vld [vmem:[#allocation5 + $0x55] ss:$0 sm:$0xff] }
 0x259   : > { %v1654_v34 = vadd.f32 %v2022_v41, %v1652_v48 }
 0x25a   : > { %v1657_v31 = vpop.permute.xlu0 %1656  ;;  %v1655_v19 = vadd.f32 %v2022_v41, %v1653_v20  ;;  %v2035_v41 = vld [vmem:[#allocation5 + $0x56] ss:$0 sm:$0xff] }
 0x25b   : > { %v1659_v9 = vpop.permute.xlu1 %1658  ;;  %v1665_v50 = vmul.f32 %v2024_v30, %v1657_v31 }
 0x25c   : > { %v1666_v26 = vmul.f32 %v2024_v30, %v1659_v9  ;;  %v2033_v9 = vld [vmem:[#allocation5 + $0x54] ss:$0 sm:$0xff] }
 0x25d   : > { %v1667_v28 = vadd.f32 %v1665_v50, %v1654_v34 }
 0x25e   : > { %v1670_v14 = vpop.permute.xlu0 %1669  ;;  %v1668_v43 = vadd.f32 %v1666_v26, %v1655_v19 }
 0x25f   : > { %v1672_v10 = vpop.permute.xlu1 %1671  ;;  %v1678_v25 = vmul.f32 %v2025_v58, %v1670_v14 }
 0x260   : > { %v1679_v49 = vmul.f32 %v2025_v58, %v1672_v10 }
 0x261   : > { %v1680_v55 = vadd.f32 %v1678_v25, %v1667_v28 }
 0x262   : > { %v1683_v37 = vpop.permute.xlu0 %1682  ;;  %v1681_v59 = vadd.f32 %v1679_v49, %v1668_v43 }
 0x263   : > { %v1685_v27 = vpop.permute.xlu1 %1684  ;;  %v1691_v42 = vmul.f32 %v2026_v53, %v1683_v37 }
 0x264   : > { %v1692_v29 = vmul.f32 %v2026_v53, %v1685_v27 }
 0x265   : > { %v1693_v40 = vadd.f32 %v1691_v42, %v1680_v55 }
 0x266   : > { %v1696_v63 = vpop.permute.xlu0 %1695  ;;  %v1694_v12 = vadd.f32 %v1692_v29, %v1681_v59 }
 0x267   : > { %v1698_v15 = vpop.permute.xlu1 %1697  ;;  %v1704_v57 = vmul.f32 %v2027_v47, %v1696_v63 }
 0x268   : > { %v1705_v4 = vmul.f32 %v2027_v47, %v1698_v15 }
 0x269   : > { %v1706_v5 = vadd.f32 %v1704_v57, %v1693_v40 }
 0x26a   : > { %v1709_v24 = vpop.permute.xlu0 %1708  ;;  %v1707_v18 = vadd.f32 %v1705_v4, %v1694_v12  ;;  %v2131_v12 = vld [vmem:[%s2459_s23 + $0x8] sm:$0xff] }
 0x26b   : > { %v1711_v2 = vpop.permute.xlu1 %1710  ;;  %v1717_v6 = vmul.f32 %v2028_v45, %v1709_v24 }
 0x26c   : > { %v1718_v61 = vmul.f32 %v2028_v45, %v1711_v2  ;;  %v2036_v2 = vld [vmem:[#allocation5 + $0x57] ss:$0 sm:$0xff] }
 0x26d   : > { %v1719_v8 = vadd.f32 %v1717_v6, %v1706_v5  ;;  %v2130_v6 = vld [vmem:[%s2459_s23] sm:$0xff] }
 0x26e   : > { %v1722_v32 = vpop.permute.xlu0 %1721  ;;  %v1720_v1 = vadd.f32 %v1718_v61, %v1707_v18 }
 0x26f   : > { %v1724_v52 = vpop.permute.xlu1 %1723  ;;  %v1730_v33 = vmul.f32 %v2029_v56, %v1722_v32 }
 0x270   : > { %v1731_v39 = vmul.f32 %v2029_v56, %v1724_v52  ;;  %v2037_v52 = vld [vmem:[#allocation5 + $0x58] ss:$0 sm:$0xff] }
 0x271   : > { %v1732_v35 = vadd.f32 %v1730_v33, %v1719_v8 }
 0x272   : > { %v1744_v44 = vpop.permute.xlu0 %1743  ;;  %v1733_v17 = vadd.f32 %v1731_v39, %v1720_v1 }
 0x273   : > { %v1746_v36 = vpop.permute.xlu1 %1745  ;;  %v1741_v62 = vadd.f32 %v1739_v0, %v1732_v35  ;;  %v1752_v22 = vmul.f32 %v2031_v21, %v1744_v44 }
 0x274   : > { %v1742_v60 = vadd.f32 %v1740_v51, %v1733_v17  ;;  %v1753_v31 = vmul.f32 %v2031_v21, %v1746_v36 }
 0x275   : > { %v1754_v63 = vadd.f32 %v1752_v22, %v1741_v62 }
 0x276   : > { %v1757_v3 = vpop.permute.xlu0 %1756  ;;  %v1755_v30 = vadd.f32 %v1753_v31, %v1742_v60 }
 0x277   : > { %v1759_v46 = vpop.permute.xlu1 %1758  ;;  %v1765_v10 = vmul.f32 %v2032_v23, %v1757_v3 }
 0x278   : > { %v1766_v27 = vmul.f32 %v2032_v23, %v1759_v46 }
 0x279   : > { %v1767_v20 = vadd.f32 %v1765_v10, %v1754_v63 }
 0x27a   : > { %v1770_v11 = vpop.permute.xlu0 %1769  ;;  %v1768_v24 = vadd.f32 %v1766_v27, %v1755_v30 }
 0x27b   : > { %v1772_v54 = vpop.permute.xlu1 %1771  ;;  %v1778_v15 = vmul.f32 %v2033_v9, %v1770_v11 }
 0x27c   : > { %v1779_v48 = vmul.f32 %v2033_v9, %v1772_v54 }
 0x27d   : > { %v1780_v26 = vadd.f32 %v1778_v15, %v1767_v20 }
 0x27e   : > { %v1783_v14 = vpop.permute.xlu0 %1782  ;;  %v1781_v34 = vadd.f32 %v1779_v48, %v1768_v24 }
 0x27f   : > { %v1785_v37 = vpop.permute.xlu1 %1784  ;;  %v1791_v58 = vmul.f32 %v2034_v16, %v1783_v14 }
 0x280   : > { %v1792_v50 = vmul.f32 %v2034_v16, %v1785_v37 }
 0x281   : > { %v1793_v49 = vadd.f32 %v1791_v58, %v1780_v26 }
 0x282   : > { %v1796_v7 = vpop.permute.xlu0 %1795  ;;  %v1794_v28 = vadd.f32 %v1792_v50, %v1781_v34 }
 0x283   : > { %v1798_v38 = vpop.permute.xlu1 %1797  ;;  %v1804_v53 = vmul.f32 %v2035_v41, %v1796_v7 }
 0x284   : > { %v1805_v25 = vmul.f32 %v2035_v41, %v1798_v38 }
 0x285   : > { %v1806_v43 = vadd.f32 %v1804_v53, %v1793_v49 }
 0x286   : > { %v1809_v19 = vpop.permute.xlu0 %1808  ;;  %v1807_v29 = vadd.f32 %v1805_v25, %v1794_v28 }
 0x287   : > { %v1817_v47 = vmul.f32 %v2036_v2, %v1809_v19  ;;  %v1811_v32 = vpop.permute.xlu1 %1810 }
 0x288   : > { %v1818_v42 = vmul.f32 %v2036_v2, %v1811_v32 }
 0x289   : > { %v1819_v55 = vadd.f32 %v1817_v47, %v1806_v43 }
 0x28a   : > { %v1822_v45 = vpop.permute.xlu0 %1821  ;;  %v1820_v4 = vadd.f32 %v1818_v42, %v1807_v29 }
 0x28b   : > { %v1830_v57 = vmul.f32 %v2037_v52, %v1822_v45  ;;  %v1824_v59 = vpop.permute.xlu1 %1823 }
 0x28c   : > { %v1831_v56 = vmul.f32 %v2037_v52, %v1824_v59 }
 0x28d   : > { %v1832_v44 = vadd.f32 %v1830_v57, %v1819_v55 }
 0x28e   : > { %v1833_v40 = vadd.f32 %v1831_v56, %v1820_v4 }
 0x28f   : > { %v1834_v36 = vmul.f32 %v2130_v6, %v1832_v44 }
 0x290   : > { %v1835_v61 = vmul.f32 %v2131_v12, %v1833_v40 }
 0x291   : > { %1836 = vst [vmem:[%s176_s7] sm:$0xff] %v1834_v36 }
 0x292   : > { %1837 = vst [vmem:[%s176_s7 + $0x8] sm:$0xff] %v1835_v61 }
 0x293   : > { %2203 = shalt.err (!%p2200_p7)
}
 0x294   : > { %s2204_s23 = scalar_lea.hbm %s2859_s26, 256  ;;  %s2208_s22 = scalar_lea.hbm %s2906_s2, 512 }
 0x295   : > { %p2205_p9 = scmp.ne.s32.totalorder %s2859_s26, %s2204_s23  ;;  %p2209_p5 = scmp.lt.u32.totalorder %s2859_s26, %s2906_s2 }
 0x296   : > { %p2210_p11 = scmp.lt.u32.totalorder %s2208_s22, %s2204_s23  ;;  %p2212_p4 = scmp.lt.u32.totalorder %s2204_s23, %s2859_s26 }
 0x297   : > { %p2206_p1 = pnand %p2205_p9, %p2402_p12 }
 0x298   : > { %p2211_p2 = por %p2210_p11, %p2209_p5 }
 0x299   : > { %p2207_p0 = pneg %p2206_p1 }
 0x29a   : > { %p2213_p6 = por %p2212_p4, %p2211_p2 }
 0x29c   : > { %p2214_p8 = pnand %p2213_p6, %p2207_p0 }
 0x29e   : > { %2217 = shalt.err (!%p2214_p8)
}
 0x29f   : > { %s2292_s6 = smov 128  }
 0x2a0   : > { %2051 = dma.vmem_to_hbm [thread:$0]  (%p2402_p12), %s2852_s20, 256, %s2859_s26, %s1839_s29, %s2292_s6, %s2292_s6, %s2267_s17  }
 0x2a1 PF: > { %s1867_s7 = sand.u32 1, %s2248_s9   ;;  %p2921_p10 = scmp.ne.s32.totalorder %s2911_s16, 0 }
 0x2a2   : > { %p2922_p13 = scmp.ge.s32.totalorder %s2260_s12, 2  ;;  %s1868_s18 = scalar_lea.sflag [#allocation4], %s1867_s7 }
 0x2a4   : > { %p2062_p3 = pnand %p2922_p13, %p2921_p10 }
 0x2a6   : > { %2243 = dma.done.wait (!%p2062_p3), %s1868_s18, 256  }
 0x2a7   : > { %2245 = vsyncadd (!%p2062_p3), %s1868_s18, 4294967040  ;;  %p16_p7 = scmp.ge.s32.totalorder %s2364_s21, 4   ;;  %s2923_s9 = smov %s2252_s10 }
 0x2a8   : > { %s2924_s10 = smov %s2256_s11  ;;  %s2925_s11 = smov %s2398_s8 }
 0x2a9   : > { %s2926_s12 = smov %s2364_s21  ;;  %18 = sbr.rel (!%p16_p7) target bundleno = 6 (0x6), region = 77 }
 0x2b0   :  { %1873 = vsyncpa [#allocation3], 1 }
 0x2b1   :  { %1875 = vsyncpa [#allocation3 + $0x1], 1 }
 0x2b2   :  { %1876 = vsyncpa [#allocation6], 1 }
 0x2b3   :  { %1877 = vsyncpa [#allocation4], 1 }
 0x2b4   :  { %1879 = vsyncpa [#allocation4 + $0x1], 1 }

</bundles_post_ra>
